<compile_context>
chip_gen: v7x
topology: tpu7x:2x2x1
jax: 0.10.0
libtpu: 0.0.40
codegen_flags: <defaults>
</compile_context>

<pallas_src>
import functools

import jax
import jax.numpy as jnp
from jax import lax
from jax.experimental import pallas as pl
from jax.experimental.pallas import tpu as pltpu


def _attn_kernel(x01_ref, idx_ref,
                 wab_ref, bab_ref,      # block-diag conv_a/conv_b : (C/2, 2C) bf16, (C/2, 1) f32
                 wlt_ref, blt_ref,      # stacked local+tri        : (2C, 5C/2) bf16, (2C, 1) f32
                 wf_ref, bf_ref,        # row-permuted fuse convs  : (2C, 2C) bf16, (2C, 1) f32
                 out_ref, *, C, W, BT):
    C2 = C // 2
    x01 = x01_ref[...]                                   # (2C, BT*W) bf16

    # --- conv_a(x_0) & conv_b(x_1): one block-diagonal matmul, N = BT*W ----
    x_all = jnp.dot(wab_ref[...], x01,
                    preferred_element_type=jnp.float32) + bab_ref[...]   # (C/2, BT*W) f32
    x_all_bf = x_all.astype(jnp.bfloat16)

    # --- MeshConv neighbor gather (per batch element, one-hot in ONE cmp) --
    iota = lax.broadcasted_iota(jnp.int32, (W, 4 * W), 0)
    extras = []
    for t in range(BT):                                  # short unrolled loop
        xt = x_all_bf[:, t * W:(t + 1) * W]              # (C/2, W) bf16
        G = (iota == idx_ref[t]).astype(jnp.bfloat16)    # (W, 4W), {0,1} exact
        g = jnp.dot(xt, G, preferred_element_type=jnp.float32)   # (C/2, 4W) f32
        n1 = g[:, 0 * W:1 * W]
        n2 = g[:, 1 * W:2 * W]
        n3 = g[:, 2 * W:3 * W]
        n4 = g[:, 3 * W:4 * W]
        extras.append(jnp.concatenate(
            [n1 + n3, n2 + n4, jnp.abs(n1 - n3), jnp.abs(n2 - n4)], axis=0))
    extra = extras[0] if BT == 1 else jnp.concatenate(extras, axis=1)    # (2C, BT*W)

    feat = jnp.concatenate([x_all_bf, extra.astype(jnp.bfloat16)], axis=0)  # (5C/2, BT*W)

    # --- local + tri branches for both a and b in ONE matmul ---------------
    # rows of lt: [a_local ; b_local ; a_tri ; b_tri]
    # (wlt keeps a zero block -- ~40% wasted MACs; negligible at C=32, split
    #  back into two dense matmuls if C scales to >=128)
    lt = jnp.dot(wlt_ref[...], feat,
                 preferred_element_type=jnp.float32) + blt_ref[...]     # (2C, BT*W)

    # --- fuse 1x1 convs (row-permuted block-sparse weight): rows [ya ; yb] -
    y = jnp.dot(wf_ref[...], lt.astype(jnp.bfloat16),
                preferred_element_type=jnp.float32) + bf_ref[...]       # (2C, BT*W)

    # --- per-sequence instance norm + sigmoid + 2-way softmax + blend ------
    for t in range(BT):
        sl = slice(t * W, (t + 1) * W)
        yt = y[:, sl]                                    # (2C, W)
        mu = jnp.mean(yt, axis=1, keepdims=True)
        ms = jnp.mean(yt * yt, axis=1, keepdims=True)    # single-pass var
        yn = (yt - mu) * lax.rsqrt(ms - mu * mu + 1e-5)
        wa = jax.nn.sigmoid(yn[:C])
        wb = jax.nn.sigmoid(yn[C:])
        a_w = jax.nn.sigmoid(wa - wb)                    # softmax over (a, b)
        x0t = x01[:C, sl].astype(jnp.float32)
        x1t = x01[C:, sl].astype(jnp.float32)
        out_ref[t] = (x1t + a_w * (x0t - x1t)).astype(out_ref.dtype)


def _prepare_params(p, C):
    """Fuse the per-branch PyTorch-style weights into stacked bf16 matrices."""
    C2, C4 = C // 2, C // 4
    f32, bf16 = jnp.float32, jnp.bfloat16

    # conv_a / conv_b -> block diagonal (C/2, 2C)
    wab_bd = jnp.zeros((C2, 2 * C), f32)
    wab_bd = wab_bd.at[:C4, :C].set(p["wab"][0]).at[C4:, C:].set(p["wab"][1])
    bab = jnp.concatenate([p["bab"][0], p["bab"][1]], axis=0)            # (C/2, 1)

    # [a_local; b_local; a_tri; b_tri] = wlt @ feat, feat = [x_all; ...gathers]
    wl_s = jnp.concatenate([p["wl"][0], p["wl"][1]], axis=0)             # (C, C/2)
    wt_s = jnp.concatenate([p["wt"][0], p["wt"][1]], axis=0)             # (C, 5C/2)
    wlt = jnp.concatenate(
        [jnp.concatenate([wl_s, jnp.zeros((C, 2 * C), f32)], axis=1), wt_s],
        axis=0)                                                          # (2C, 5C/2)
    blt = jnp.concatenate([p["bl"][0], p["bl"][1], p["bt"][0], p["bt"][1]], axis=0)

    # fuse convs, re-permuted so they contract directly against lt rows
    wfuse = jnp.zeros((2 * C, 2 * C), f32)
    wfuse = wfuse.at[:C, :C2].set(p["wf"][0][:, :C2])        # ya <- a_local
    wfuse = wfuse.at[:C, C:C + C2].set(p["wf"][0][:, C2:])   # ya <- a_tri
    wfuse = wfuse.at[C:, C2:C].set(p["wf"][1][:, :C2])       # yb <- b_local
    wfuse = wfuse.at[C:, C + C2:].set(p["wf"][1][:, C2:])    # yb <- b_tri
    bfuse = jnp.concatenate([p["bf"][0], p["bf"][1]], axis=0)            # (2C, 1)

    return (wab_bd.astype(bf16), bab, wlt.astype(bf16), blt,
            wfuse.astype(bf16), bfuse)


def _default_batch_block(B):
    # Tiny batches: whole batch in one step (amortize ~0.35us/step overhead,
    # widen the matmul lane stream).  Large batches: keep several grid steps
    # so double-buffering overlaps and v7x's 2 TensorCores both get work.
    if B <= 4:
        return B
    bt = max(1, B // 8)
    while B % bt:
        bt -= 1
    return bt


def attn_forward(x0, x1, mesh_idx, params, *, batch_block=None):
    """x0, x1: (B, C, W) float32; mesh_idx: (B, 4, W) int32 neighbor indices."""
    B, C, W = x0.shape
    assert C % 4 == 0 and W % 128 == 0
    BT = _default_batch_block(B) if batch_block is None else batch_block
    assert B % BT == 0
    steps = B // BT

    wab, bab, wlt, blt, wfuse, bfuse = _prepare_params(params, C)

    # Pre-stack, bf16-cast, and fold batch into the lane axis: (2C, B*W).
    # Rows 0..C-1 are x0, rows C..2C-1 are x1; lanes [t*W,(t+1)*W) are batch t.
    x01 = jnp.concatenate([x0, x1], axis=1).astype(jnp.bfloat16)   # (B, 2C, W)
    x01 = jnp.transpose(x01, (1, 0, 2)).reshape(2 * C, B * W)      # (2C, B*W)
    idx_flat = mesh_idx.astype(jnp.int32).reshape(B, 1, 4 * W)     # (B, 1, 4W)

    flops = 2 * B * ((C // 2) * 2 * C * W + (C // 2) * W * 4 * W
                     + 2 * C * 5 * (C // 2) * W + 2 * C * 2 * C * W)
    bytes_accessed = (x01.size * 2 + idx_flat.size * 4 + B * C * W * 4
                      + 2 * (wab.size + wlt.size + wfuse.size)
                      + 4 * (bab.size + blt.size + bfuse.size))
    cost = pl.CostEstimate(flops=flops, transcendentals=3 * B * C * W,
                           bytes_accessed=bytes_accessed)

    full2 = lambda shape: pl.BlockSpec(shape, lambda b: (0, 0))

    return pl.pallas_call(
        functools.partial(_attn_kernel, C=C, W=W, BT=BT),
        out_shape=jax.ShapeDtypeStruct((B, C, W), jnp.float32),
        grid=(steps,),
        in_specs=[
            pl.BlockSpec((2 * C, BT * W), lambda b: (0, b)),     # x01 (lane-folded)
            pl.BlockSpec((BT, 1, 4 * W), lambda b: (b, 0, 0)),   # mesh neighbor idx
            full2(wab.shape), full2(bab.shape),
            full2(wlt.shape), full2(blt.shape),
            full2(wfuse.shape), full2(bfuse.shape),
        ],
        out_specs=pl.BlockSpec((BT, C, W), lambda b: (b, 0, 0)),
        compiler_params=pltpu.CompilerParams(dimension_semantics=("parallel",)),
        cost_estimate=cost,
    )(x01, idx_flat, wab, bab, wlt, blt, wfuse, bfuse)


# ---------------------------- pure-JAX reference ----------------------------
def attn_reference(x0, x1, mesh_idx, p):
    def conv1x1(w, b, x):  # w: (Co, Ci), b: (Co, 1), x: (B, Ci, W)
        return jnp.einsum("oc,bcw->bow", w, x) + b[None]

    def inorm(y, eps=1e-5):
        mu = jnp.mean(y, axis=2, keepdims=True)
        var = jnp.mean((y - mu) ** 2, axis=2, keepdims=True)
        return (y - mu) / jnp.sqrt(var + eps)

    x_a = conv1x1(p["wab"][0], p["bab"][0], x0)
    x_b = conv1x1(p["wab"][1], p["bab"][1], x1)
    x_all = jnp.concatenate([x_a, x_b], axis=1)          # (B, C/2, W)

    a_local = conv1x1(p["wl"][0], p["bl"][0], x_all)
    b_local = conv1x1(p["wl"][1], p["bl"][1], x_all)

    def gather(k):
        idx = mesh_idx[:, k, :][:, None, :]               # (B, 1, W)
        idx = jnp.broadcast_to(idx, x_all.shape)
        return jnp.take_along_axis(x_all, idx, axis=2)

    n1, n2, n3, n4 = gather(0), gather(1), gather(2), gather(3)
    feat = jnp.concatenate(
        [x_all, n1 + n3, n2 + n4, jnp.abs(n1 - n3), jnp.abs(n2 - n4)], axis=1)
    a_tri = conv1x1(p["wt"][0], p["bt"][0], feat)
    b_tri = conv1x1(p["wt"][1], p["bt"][1], feat)

    x_a_two = jnp.concatenate([a_local, a_tri], axis=1)
    x_b_two = jnp.concatenate([b_local, b_tri], axis=1)

    wa = jax.nn.sigmoid(inorm(conv1x1(p["wf"][0], p["bf"][0], x_a_two)))
    wb = jax.nn.sigmoid(inorm(conv1x1(p["wf"][1], p["bf"][1], x_b_two)))

    stacked = jnp.stack([wa, wb], axis=1)                 # (B, 2, C, W)
    weights = jax.nn.softmax(stacked, axis=1)
    return x0 * weights[:, 0] + x1 * weights[:, 1]


# --------------------------------- main --------------------------------------
def _init_params(key, C):
    C4, C2 = C // 4, C // 2
    ks = jax.random.split(key, 8)

    def w(k, shape, fan_in):
        return (jax.random.normal(k, shape, jnp.float32) / jnp.sqrt(fan_in)).astype(jnp.float32)

    return {
        "wab": w(ks[0], (2, C4, C), C),
        "bab": w(ks[1], (2, C4, 1), C),
        "wl":  w(ks[2], (2, C2, C2), C2),
        "bl":  w(ks[3], (2, C2, 1), C2),
        "wt":  w(ks[4], (2, C2, 5 * C2), 5 * C2),
        "bt":  w(ks[5], (2, C2, 1), 5 * C2),
        "wf":  w(ks[6], (2, C, C), C),
        "bf":  w(ks[7], (2, C, 1), C),
    }


if __name__ == "__main__":
    B, C, W = 2, 32, 128   # batch, in_dim, num mesh edges
    key = jax.random.PRNGKey(0)
    k0, k1, k2, k3 = jax.random.split(key, 4)

    x0 = jax.random.normal(k0, (B, C, W), jnp.float32)
    x1 = jax.random.normal(k1, (B, C, W), jnp.float32)
    mesh_idx = jax.random.randint(k2, (B, 4, W), 0, W, jnp.int32)
    params = _init_params(k3, C)

    out = attn_forward(x0, x1, mesh_idx, params)
    out = jax.block_until_ready(out)

    ref = attn_reference(x0, x1, mesh_idx, params)
    ref = jax.block_until_ready(ref)

    assert out.shape == (B, C, W)
    # bf16 MXU / bf16-at-HBM path -> relaxed tolerance vs. the f32 reference.
    assert jnp.allclose(out, ref, atol=5e-2, rtol=5e-2), "mismatch vs reference"
    print("KERNEL_OK")
</pallas_src>

<mosaic_0001>
module attributes {stable_mosaic.version = 11 : i64} {
  func.func @_attn_kernel(%arg0: i32, %arg1: memref<64x256xbf16, #tpu.memory_space<vmem>>, %arg2: memref<2x1x512xi32, #tpu.memory_space<vmem>>, %arg3: memref<16x64xbf16, #tpu.memory_space<vmem>>, %arg4: memref<16x1xf32, #tpu.memory_space<vmem>>, %arg5: memref<64x80xbf16, #tpu.memory_space<vmem>>, %arg6: memref<64x1xf32, #tpu.memory_space<vmem>>, %arg7: memref<64x64xbf16, #tpu.memory_space<vmem>>, %arg8: memref<64x1xf32, #tpu.memory_space<vmem>>, %arg9: memref<2x32x128xf32, #tpu.memory_space<vmem>>) attributes {dimension_semantics = [#tpu.dimension_semantics<parallel>], iteration_bounds = array<i64: 1>, scalar_prefetch = 0 : i64, scratch_operands = 0 : i64, tpu.core_type = #tpu.core_type<tc>, window_params = [{transform_indices = @transform_0, window_bounds = array<i64: 64, 256>}, {transform_indices = @transform_1, window_bounds = array<i64: 2, 1, 512>}, {pipeline_mode = #tpu.pipeline_mode<synchronous>, transform_indices = @transform_2, window_bounds = array<i64: 16, 64>}, {pipeline_mode = #tpu.pipeline_mode<synchronous>, transform_indices = @transform_3, window_bounds = array<i64: 16, 1>}, {pipeline_mode = #tpu.pipeline_mode<synchronous>, transform_indices = @transform_4, window_bounds = array<i64: 64, 80>}, {pipeline_mode = #tpu.pipeline_mode<synchronous>, transform_indices = @transform_5, window_bounds = array<i64: 64, 1>}, {pipeline_mode = #tpu.pipeline_mode<synchronous>, transform_indices = @transform_6, window_bounds = array<i64: 64, 64>}, {pipeline_mode = #tpu.pipeline_mode<synchronous>, transform_indices = @transform_7, window_bounds = array<i64: 64, 1>}, {transform_indices = @transform_8, window_bounds = array<i64: 2, 32, 128>}]} {
    %c0 = arith.constant 0 : index
    %c0_0 = arith.constant 0 : index
    %0 = vector.load %arg1[%c0, %c0_0] : memref<64x256xbf16, #tpu.memory_space<vmem>>, vector<64x256xbf16>
    %c0_1 = arith.constant 0 : index
    %c0_2 = arith.constant 0 : index
    %1 = vector.load %arg3[%c0_1, %c0_2] : memref<16x64xbf16, #tpu.memory_space<vmem>>, vector<16x64xbf16>
    %cst = arith.constant dense<0.000000e+00> : vector<16x256xf32>
    %2 = tpu.matmul %1, %0, %cst {dimension_numbers = #tpu.dot_dimension_numbers<[1], [0], [0], [1], [0, 0, 1, 1], [], []>} : vector<16x64xbf16>, vector<64x256xbf16>, vector<16x256xf32> -> vector<16x256xf32>
    %c0_3 = arith.constant 0 : index
    %c0_4 = arith.constant 0 : index
    %3 = vector.load %arg4[%c0_3, %c0_4] : memref<16x1xf32, #tpu.memory_space<vmem>>, vector<16x1xf32>
    %4 = vector.broadcast %3 : vector<16x1xf32> to vector<16x256xf32>
    %5 = arith.addf %2, %4 : vector<16x256xf32>
    %6 = arith.truncf %5 : vector<16x256xf32> to vector<16x256xbf16>
    %7 = tpu.iota {dimensions = array<i32: 0>} : vector<128x512xi32>
    %8 = vector.extract_strided_slice %6 {offsets = [0, 0], sizes = [16, 128], strides = [1, 1]} : vector<16x256xbf16> to vector<16x128xbf16>
    %c0_5 = arith.constant 0 : index
    %c0_6 = arith.constant 0 : index
    %c0_7 = arith.constant 0 : index
    %9 = vector.load %arg2[%c0_5, %c0_6, %c0_7] : memref<2x1x512xi32, #tpu.memory_space<vmem>>, vector<1x1x512xi32>
    %10 = vector.shape_cast %9 : vector<1x1x512xi32> to vector<1x512xi32>
    %11 = vector.broadcast %10 : vector<1x512xi32> to vector<128x512xi32>
    %12 = arith.cmpi eq, %7, %11 : vector<128x512xi32>
    %13 = arith.extui %12 : vector<128x512xi1> to vector<128x512xi32>
    %14 = arith.sitofp %13 : vector<128x512xi32> to vector<128x512xf32>
    %15 = arith.truncf %14 : vector<128x512xf32> to vector<128x512xbf16>
    %cst_8 = arith.constant dense<0.000000e+00> : vector<16x512xf32>
    %16 = tpu.matmul %8, %15, %cst_8 {dimension_numbers = #tpu.dot_dimension_numbers<[1], [0], [0], [1], [0, 0, 1, 1], [], []>} : vector<16x128xbf16>, vector<128x512xbf16>, vector<16x512xf32> -> vector<16x512xf32>
    %17 = vector.extract_strided_slice %16 {offsets = [0, 0], sizes = [16, 128], strides = [1, 1]} : vector<16x512xf32> to vector<16x128xf32>
    %18 = vector.extract_strided_slice %16 {offsets = [0, 128], sizes = [16, 128], strides = [1, 1]} : vector<16x512xf32> to vector<16x128xf32>
    %19 = vector.extract_strided_slice %16 {offsets = [0, 256], sizes = [16, 128], strides = [1, 1]} : vector<16x512xf32> to vector<16x128xf32>
    %20 = vector.extract_strided_slice %16 {offsets = [0, 384], sizes = [16, 128], strides = [1, 1]} : vector<16x512xf32> to vector<16x128xf32>
    %21 = arith.addf %17, %19 : vector<16x128xf32>
    %22 = arith.addf %18, %20 : vector<16x128xf32>
    %23 = arith.subf %17, %19 : vector<16x128xf32>
    %24 = math.absf %23 : vector<16x128xf32>
    %25 = arith.subf %18, %20 : vector<16x128xf32>
    %26 = math.absf %25 : vector<16x128xf32>
    %27 = tpu.concatenate %21, %22, %24, %26 in 0 : vector<16x128xf32>, vector<16x128xf32>, vector<16x128xf32>, vector<16x128xf32> -> vector<64x128xf32>
    %28 = vector.extract_strided_slice %6 {offsets = [0, 128], sizes = [16, 128], strides = [1, 1]} : vector<16x256xbf16> to vector<16x128xbf16>
    %c1 = arith.constant 1 : index
    %c0_9 = arith.constant 0 : index
    %c0_10 = arith.constant 0 : index
    %29 = vector.load %arg2[%c1, %c0_9, %c0_10] : memref<2x1x512xi32, #tpu.memory_space<vmem>>, vector<1x1x512xi32>
    %30 = vector.shape_cast %29 : vector<1x1x512xi32> to vector<1x512xi32>
    %31 = vector.broadcast %30 : vector<1x512xi32> to vector<128x512xi32>
    %32 = arith.cmpi eq, %7, %31 : vector<128x512xi32>
    %33 = arith.extui %32 : vector<128x512xi1> to vector<128x512xi32>
    %34 = arith.sitofp %33 : vector<128x512xi32> to vector<128x512xf32>
    %35 = arith.truncf %34 : vector<128x512xf32> to vector<128x512xbf16>
    %cst_11 = arith.constant dense<0.000000e+00> : vector<16x512xf32>
    %36 = tpu.matmul %28, %35, %cst_11 {dimension_numbers = #tpu.dot_dimension_numbers<[1], [0], [0], [1], [0, 0, 1, 1], [], []>} : vector<16x128xbf16>, vector<128x512xbf16>, vector<16x512xf32> -> vector<16x512xf32>
    %37 = vector.extract_strided_slice %36 {offsets = [0, 0], sizes = [16, 128], strides = [1, 1]} : vector<16x512xf32> to vector<16x128xf32>
    %38 = vector.extract_strided_slice %36 {offsets = [0, 128], sizes = [16, 128], strides = [1, 1]} : vector<16x512xf32> to vector<16x128xf32>
    %39 = vector.extract_strided_slice %36 {offsets = [0, 256], sizes = [16, 128], strides = [1, 1]} : vector<16x512xf32> to vector<16x128xf32>
    %40 = vector.extract_strided_slice %36 {offsets = [0, 384], sizes = [16, 128], strides = [1, 1]} : vector<16x512xf32> to vector<16x128xf32>
    %41 = arith.addf %37, %39 : vector<16x128xf32>
    %42 = arith.addf %38, %40 : vector<16x128xf32>
    %43 = arith.subf %37, %39 : vector<16x128xf32>
    %44 = math.absf %43 : vector<16x128xf32>
    %45 = arith.subf %38, %40 : vector<16x128xf32>
    %46 = math.absf %45 : vector<16x128xf32>
    %47 = tpu.concatenate %41, %42, %44, %46 in 0 : vector<16x128xf32>, vector<16x128xf32>, vector<16x128xf32>, vector<16x128xf32> -> vector<64x128xf32>
    %48 = tpu.concatenate %27, %47 in 1 : vector<64x128xf32>, vector<64x128xf32> -> vector<64x256xf32>
    %49 = arith.truncf %48 : vector<64x256xf32> to vector<64x256xbf16>
    %50 = tpu.concatenate %6, %49 in 0 : vector<16x256xbf16>, vector<64x256xbf16> -> vector<80x256xbf16>
    %c0_12 = arith.constant 0 : index
    %c0_13 = arith.constant 0 : index
    %51 = vector.load %arg5[%c0_12, %c0_13] : memref<64x80xbf16, #tpu.memory_space<vmem>>, vector<64x80xbf16>
    %cst_14 = arith.constant dense<0.000000e+00> : vector<64x256xf32>
    %52 = tpu.matmul %51, %50, %cst_14 {dimension_numbers = #tpu.dot_dimension_numbers<[1], [0], [0], [1], [0, 0, 1, 1], [], []>} : vector<64x80xbf16>, vector<80x256xbf16>, vector<64x256xf32> -> vector<64x256xf32>
    %c0_15 = arith.constant 0 : index
    %c0_16 = arith.constant 0 : index
    %53 = vector.load %arg6[%c0_15, %c0_16] : memref<64x1xf32, #tpu.memory_space<vmem>>, vector<64x1xf32>
    %54 = vector.broadcast %53 : vector<64x1xf32> to vector<64x256xf32>
    %55 = arith.addf %52, %54 : vector<64x256xf32>
    %c0_17 = arith.constant 0 : index
    %c0_18 = arith.constant 0 : index
    %56 = vector.load %arg7[%c0_17, %c0_18] : memref<64x64xbf16, #tpu.memory_space<vmem>>, vector<64x64xbf16>
    %57 = arith.truncf %55 : vector<64x256xf32> to vector<64x256xbf16>
    %cst_19 = arith.constant dense<0.000000e+00> : vector<64x256xf32>
    %58 = tpu.matmul %56, %57, %cst_19 {dimension_numbers = #tpu.dot_dimension_numbers<[1], [0], [0], [1], [0, 0, 1, 1], [], []>} : vector<64x64xbf16>, vector<64x256xbf16>, vector<64x256xf32> -> vector<64x256xf32>
    %c0_20 = arith.constant 0 : index
    %c0_21 = arith.constant 0 : index
    %59 = vector.load %arg8[%c0_20, %c0_21] : memref<64x1xf32, #tpu.memory_space<vmem>>, vector<64x1xf32>
    %60 = vector.broadcast %59 : vector<64x1xf32> to vector<64x256xf32>
    %61 = arith.addf %58, %60 : vector<64x256xf32>
    %62 = vector.extract_strided_slice %61 {offsets = [0, 0], sizes = [64, 128], strides = [1, 1]} : vector<64x256xf32> to vector<64x128xf32>
    %cst_22 = arith.constant dense<0.000000e+00> : vector<64xf32>
    %63 = vector.multi_reduction <add>, %62, %cst_22 [1] : vector<64x128xf32> to vector<64xf32>
    %64 = vector.shape_cast %63 : vector<64xf32> to vector<64x1xf32>
    %cst_23 = arith.constant 1.280000e+02 : f32
    %65 = vector.broadcast %cst_23 : f32 to vector<64x1xf32>
    %66 = arith.divf %64, %65 : vector<64x1xf32>
    %67 = arith.mulf %62, %62 : vector<64x128xf32>
    %cst_24 = arith.constant dense<0.000000e+00> : vector<64xf32>
    %68 = vector.multi_reduction <add>, %67, %cst_24 [1] : vector<64x128xf32> to vector<64xf32>
    %69 = vector.shape_cast %68 : vector<64xf32> to vector<64x1xf32>
    %cst_25 = arith.constant 1.280000e+02 : f32
    %70 = vector.broadcast %cst_25 : f32 to vector<64x1xf32>
    %71 = arith.divf %69, %70 : vector<64x1xf32>
    %72 = vector.broadcast %66 : vector<64x1xf32> to vector<64x128xf32>
    %73 = arith.subf %62, %72 : vector<64x128xf32>
    %74 = arith.mulf %66, %66 : vector<64x1xf32>
    %75 = arith.subf %71, %74 : vector<64x1xf32>
    %cst_26 = arith.constant 9.99999974E-6 : f32
    %76 = vector.broadcast %cst_26 : f32 to vector<64x1xf32>
    %77 = arith.addf %75, %76 : vector<64x1xf32>
    %78 = math.rsqrt %77 : vector<64x1xf32>
    %79 = vector.broadcast %78 : vector<64x1xf32> to vector<64x128xf32>
    %80 = arith.mulf %73, %79 : vector<64x128xf32>
    %81 = vector.extract_strided_slice %80 {offsets = [0, 0], sizes = [32, 128], strides = [1, 1]} : vector<64x128xf32> to vector<32x128xf32>
    %82 = arith.negf %81 : vector<32x128xf32>
    %83 = math.exp %82 : vector<32x128xf32>
    %cst_27 = arith.constant 1.000000e+00 : f32
    %84 = vector.broadcast %cst_27 : f32 to vector<32x128xf32>
    %85 = arith.addf %84, %83 : vector<32x128xf32>
    %86 = arith.divf %84, %85 : vector<32x128xf32>
    %87 = vector.extract_strided_slice %80 {offsets = [32, 0], sizes = [32, 128], strides = [1, 1]} : vector<64x128xf32> to vector<32x128xf32>
    %88 = arith.negf %87 : vector<32x128xf32>
    %89 = math.exp %88 : vector<32x128xf32>
    %cst_28 = arith.constant 1.000000e+00 : f32
    %90 = vector.broadcast %cst_28 : f32 to vector<32x128xf32>
    %91 = arith.addf %90, %89 : vector<32x128xf32>
    %92 = arith.divf %90, %91 : vector<32x128xf32>
    %93 = arith.subf %86, %92 : vector<32x128xf32>
    %94 = arith.negf %93 : vector<32x128xf32>
    %95 = math.exp %94 : vector<32x128xf32>
    %cst_29 = arith.constant 1.000000e+00 : f32
    %96 = vector.broadcast %cst_29 : f32 to vector<32x128xf32>
    %97 = arith.addf %96, %95 : vector<32x128xf32>
    %98 = arith.divf %96, %97 : vector<32x128xf32>
    %99 = vector.extract_strided_slice %0 {offsets = [0, 0], sizes = [32, 128], strides = [1, 1]} : vector<64x256xbf16> to vector<32x128xbf16>
    %100 = arith.extf %99 : vector<32x128xbf16> to vector<32x128xf32>
    %101 = vector.extract_strided_slice %0 {offsets = [32, 0], sizes = [32, 128], strides = [1, 1]} : vector<64x256xbf16> to vector<32x128xbf16>
    %102 = arith.extf %101 : vector<32x128xbf16> to vector<32x128xf32>
    %103 = arith.subf %100, %102 : vector<32x128xf32>
    %104 = arith.mulf %98, %103 : vector<32x128xf32>
    %105 = arith.addf %102, %104 : vector<32x128xf32>
    %c0_30 = arith.constant 0 : index
    %c0_31 = arith.constant 0 : index
    %c0_32 = arith.constant 0 : index
    %106 = vector.load %arg9[%c0_30, %c0_31, %c0_32] : memref<2x32x128xf32, #tpu.memory_space<vmem>>, vector<1x32x128xf32>
    %107 = vector.shape_cast %106 : vector<1x32x128xf32> to vector<32x128xf32>
    %108 = vector.shape_cast %105 : vector<32x128xf32> to vector<1x32x128xf32>
    tpu.vector_store %arg9[%c0_30, %c0_31, %c0_32], %108 {strides = array<i32>} : memref<2x32x128xf32, #tpu.memory_space<vmem>>, vector<1x32x128xf32>,
    %109 = vector.extract_strided_slice %61 {offsets = [0, 128], sizes = [64, 128], strides = [1, 1]} : vector<64x256xf32> to vector<64x128xf32>
    %cst_33 = arith.constant dense<0.000000e+00> : vector<64xf32>
    %110 = vector.multi_reduction <add>, %109, %cst_33 [1] : vector<64x128xf32> to vector<64xf32>
    %111 = vector.shape_cast %110 : vector<64xf32> to vector<64x1xf32>
    %cst_34 = arith.constant 1.280000e+02 : f32
    %112 = vector.broadcast %cst_34 : f32 to vector<64x1xf32>
    %113 = arith.divf %111, %112 : vector<64x1xf32>
    %114 = arith.mulf %109, %109 : vector<64x128xf32>
    %cst_35 = arith.constant dense<0.000000e+00> : vector<64xf32>
    %115 = vector.multi_reduction <add>, %114, %cst_35 [1] : vector<64x128xf32> to vector<64xf32>
    %116 = vector.shape_cast %115 : vector<64xf32> to vector<64x1xf32>
    %cst_36 = arith.constant 1.280000e+02 : f32
    %117 = vector.broadcast %cst_36 : f32 to vector<64x1xf32>
    %118 = arith.divf %116, %117 : vector<64x1xf32>
    %119 = vector.broadcast %113 : vector<64x1xf32> to vector<64x128xf32>
    %120 = arith.subf %109, %119 : vector<64x128xf32>
    %121 = arith.mulf %113, %113 : vector<64x1xf32>
    %122 = arith.subf %118, %121 : vector<64x1xf32>
    %cst_37 = arith.constant 9.99999974E-6 : f32
    %123 = vector.broadcast %cst_37 : f32 to vector<64x1xf32>
    %124 = arith.addf %122, %123 : vector<64x1xf32>
    %125 = math.rsqrt %124 : vector<64x1xf32>
    %126 = vector.broadcast %125 : vector<64x1xf32> to vector<64x128xf32>
    %127 = arith.mulf %120, %126 : vector<64x128xf32>
    %128 = vector.extract_strided_slice %127 {offsets = [0, 0], sizes = [32, 128], strides = [1, 1]} : vector<64x128xf32> to vector<32x128xf32>
    %129 = arith.negf %128 : vector<32x128xf32>
    %130 = math.exp %129 : vector<32x128xf32>
    %cst_38 = arith.constant 1.000000e+00 : f32
    %131 = vector.broadcast %cst_38 : f32 to vector<32x128xf32>
    %132 = arith.addf %131, %130 : vector<32x128xf32>
    %133 = arith.divf %131, %132 : vector<32x128xf32>
    %134 = vector.extract_strided_slice %127 {offsets = [32, 0], sizes = [32, 128], strides = [1, 1]} : vector<64x128xf32> to vector<32x128xf32>
    %135 = arith.negf %134 : vector<32x128xf32>
    %136 = math.exp %135 : vector<32x128xf32>
    %cst_39 = arith.constant 1.000000e+00 : f32
    %137 = vector.broadcast %cst_39 : f32 to vector<32x128xf32>
    %138 = arith.addf %137, %136 : vector<32x128xf32>
    %139 = arith.divf %137, %138 : vector<32x128xf32>
    %140 = arith.subf %133, %139 : vector<32x128xf32>
    %141 = arith.negf %140 : vector<32x128xf32>
    %142 = math.exp %141 : vector<32x128xf32>
    %cst_40 = arith.constant 1.000000e+00 : f32
    %143 = vector.broadcast %cst_40 : f32 to vector<32x128xf32>
    %144 = arith.addf %143, %142 : vector<32x128xf32>
    %145 = arith.divf %143, %144 : vector<32x128xf32>
    %146 = vector.extract_strided_slice %0 {offsets = [0, 128], sizes = [32, 128], strides = [1, 1]} : vector<64x256xbf16> to vector<32x128xbf16>
    %147 = arith.extf %146 : vector<32x128xbf16> to vector<32x128xf32>
    %148 = vector.extract_strided_slice %0 {offsets = [32, 128], sizes = [32, 128], strides = [1, 1]} : vector<64x256xbf16> to vector<32x128xbf16>
    %149 = arith.extf %148 : vector<32x128xbf16> to vector<32x128xf32>
    %150 = arith.subf %147, %149 : vector<32x128xf32>
    %151 = arith.mulf %145, %150 : vector<32x128xf32>
    %152 = arith.addf %149, %151 : vector<32x128xf32>
    %c1_41 = arith.constant 1 : index
    %c0_42 = arith.constant 0 : index
    %c0_43 = arith.constant 0 : index
    %153 = vector.load %arg9[%c1_41, %c0_42, %c0_43] : memref<2x32x128xf32, #tpu.memory_space<vmem>>, vector<1x32x128xf32>
    %154 = vector.shape_cast %153 : vector<1x32x128xf32> to vector<32x128xf32>
    %155 = vector.shape_cast %152 : vector<32x128xf32> to vector<1x32x128xf32>
    tpu.vector_store %arg9[%c1_41, %c0_42, %c0_43], %155 {strides = array<i32>} : memref<2x32x128xf32, #tpu.memory_space<vmem>>, vector<1x32x128xf32>,
    return
  }
  func.func @transform_0(%arg0: i32) -> (i32, i32) {
    %c0_i32 = arith.constant 0 : i32
    %c0_i32_0 = arith.constant 0 : i32
    return %c0_i32, %arg0 : i32, i32
  }
  func.func @transform_1(%arg0: i32) -> (i32, i32, i32) {
    %c0_i32 = arith.constant 0 : i32
    %c0_i32_0 = arith.constant 0 : i32
    %c0_i32_1 = arith.constant 0 : i32
    return %arg0, %c0_i32, %c0_i32_0 : i32, i32, i32
  }
  func.func @transform_2(%arg0: i32) -> (i32, i32) {
    %c0_i32 = arith.constant 0 : i32
    %c0_i32_0 = arith.constant 0 : i32
    %c0_i32_1 = arith.constant 0 : i32
    return %c0_i32, %c0_i32_0 : i32, i32
  }
  func.func @transform_3(%arg0: i32) -> (i32, i32) {
    %c0_i32 = arith.constant 0 : i32
    %c0_i32_0 = arith.constant 0 : i32
    %c0_i32_1 = arith.constant 0 : i32
    return %c0_i32, %c0_i32_0 : i32, i32
  }
  func.func @transform_4(%arg0: i32) -> (i32, i32) {
    %c0_i32 = arith.constant 0 : i32
    %c0_i32_0 = arith.constant 0 : i32
    %c0_i32_1 = arith.constant 0 : i32
    return %c0_i32, %c0_i32_0 : i32, i32
  }
  func.func @transform_5(%arg0: i32) -> (i32, i32) {
    %c0_i32 = arith.constant 0 : i32
    %c0_i32_0 = arith.constant 0 : i32
    %c0_i32_1 = arith.constant 0 : i32
    return %c0_i32, %c0_i32_0 : i32, i32
  }
  func.func @transform_6(%arg0: i32) -> (i32, i32) {
    %c0_i32 = arith.constant 0 : i32
    %c0_i32_0 = arith.constant 0 : i32
    %c0_i32_1 = arith.constant 0 : i32
    return %c0_i32, %c0_i32_0 : i32, i32
  }
  func.func @transform_7(%arg0: i32) -> (i32, i32) {
    %c0_i32 = arith.constant 0 : i32
    %c0_i32_0 = arith.constant 0 : i32
    %c0_i32_1 = arith.constant 0 : i32
    return %c0_i32, %c0_i32_0 : i32, i32
  }
  func.func @transform_8(%arg0: i32) -> (i32, i32, i32) {
    %c0_i32 = arith.constant 0 : i32
    %c0_i32_0 = arith.constant 0 : i32
    %c0_i32_1 = arith.constant 0 : i32
    return %arg0, %c0_i32, %c0_i32_0 : i32, i32, i32
  }
}

</mosaic_0001>

<bundles_post_ra>
// kernel: tpu_custom_call.1
= control target key start
LH: loop header
LB: loop body
LE: loop exit
PB: predicated region body
PF: predicated region fallthrough
CT: control target
= control target key end

     0   :  { %v2107_v7 = vmov 0   ;;  %v147_v46 = vlaneseq  ;;  %s3065_s0 = inlined_call_operand.vmem [shape: bf16[64,256], index: 0, kind: input, shape index: {}]   ;;  %s3066_s1 = inlined_call_operand.vmem [shape: s32[2,1,512], index: 1, kind: input, shape index: {}]   ;;  %s3067_s2 = inlined_call_operand.vmem [shape: bf16[16,64], index: 2, kind: input, shape index: {}]   ;;  %s3068_s3 = inlined_call_operand.vmem [shape: f32[16,1], index: 3, kind: input, shape index: {}]   ;;  %s3069_s4 = inlined_call_operand.vmem [shape: bf16[64,80], index: 4, kind: input, shape index: {}]   ;;  %s3070_s5 = inlined_call_operand.vmem [shape: f32[64,1], index: 5, kind: input, shape index: {}]   ;;  %s3071_s6 = inlined_call_operand.vmem [shape: bf16[64,64], index: 6, kind: input, shape index: {}]   ;;  %s3072_s7 = inlined_call_operand.vmem [shape: f32[64,1], index: 7, kind: input, shape index: {}]   ;;  %s3073_s8 = inlined_call_operand.hbm [shape: f32[2,32,128], index: 8, kind: output, shape index: {}]  }
   0x1   :  { %v31_v0 = vld [vmem:[%s3065_s0] sm:$0xff]  ;;  %v32_v1 = vld [vmem:[%s3065_s0 + $0x8] sm:$0xff]  ;;  %v33_v2 = vld [vmem:[%s3065_s0 + $0x10] sm:$0xff]  ;;  %134 = vmatprep.mubr.bf16.mxu0 %v2107_v7  ;;  %1936 = vset.pattern.permute.xlu0 %v2107_v7 }
   0x2   :  { %v1626_v3 = vcombine.high %v31_v0, %v32_v1  ;;  %v1363_v4 = vunpack.c.l.bf16 %v31_v0  ;;  %v1567_v5 = vrot.slane %v31_v0, 4  ;;  %v34_v6 = vld [vmem:[%s3065_s0 + $0x18] sm:$0xff]  ;;  %v1364_v8 = vunpack.c.l.bf16 %v32_v1  ;;  %v2174_v12 = vld [vmem:[%s3065_s0 + $0x20] sm:$0xff]  ;;  %v2179_v13 = vld [vmem:[%s3065_s0 + $0x28] sm:$0xff]  ;;  %437 = vmatprep.mubr.bf16.mxu1 %v2107_v7  ;;  %1937 = vset.pattern.permute.xlu1 %v2107_v7 }
   0x3   :  { %v1568_v9 = vrot.slane %v32_v1, 4  ;;  %v1625_v10 = vcombine.low %v31_v0, %v32_v1  ;;  %v1628_v11 = vcombine.high %v33_v2, %v34_v6  ;;  %v1365_v15 = vunpack.c.l.bf16 %v33_v2  ;;  %v41_v18 = vld [vmem:[%s3068_s3] sm:$0xff]  ;;  %v2200_v27 = vld [vmem:[%s3065_s0 + $0x30] sm:$0xff]  ;;  %v2205_v28 = vld [vmem:[%s3065_s0 + $0x38] sm:$0xff] }
   0x4   :  { %102 = vmatprep.subr.bf16.mxu0 %v1626_v3  ;;  %v2183_v14 = vunpack.c.l.bf16 %v1567_v5  ;;  %v1569_v16 = vrot.slane %v33_v2, 4  ;;  %v1570_v17 = vrot.slane %v34_v6, 4  ;;  %v1366_v20 = vunpack.c.l.bf16 %v34_v6  ;;  %45 = vperm.xlu0 %1936, %v41_v18   ;;  %v42_v29 = vld [vmem:[%s3068_s3 + $0x8] sm:$0xff]  ;;  %v861_v38 = vld [vmem:[%s3070_s5 + $0x10] sm:$0xff]  ;;  %v164_v50 = vld [vmem:[%s3066_s1] sm:$0xf] }
   0x5   :  { %v2188_v19 = vunpack.c.l.bf16 %v1568_v9  ;;  %103 = vmatpush1.bf16.msra.mxu0 %v1625_v10  ;;  %v1627_v21 = vcombine.low %v33_v2, %v34_v6  ;;  %v3078_v22 = vunpack.c.l.bf16 %v2174_v12  ;;  %v1630_v24 = vcombine.high %v2174_v12, %v2179_v13  ;;  %v863_v51 = vld [vmem:[%s3070_s5 + $0x20] sm:$0xff] }
   0x6   :  { %104 = vmatprep.subr.bf16.mxu0 %v1628_v11  ;;  %v2191_v23 = vunpack.c.l.bf16 %v1569_v16  ;;  %v3077_v25 = vunpack.c.l.bf16 %v2179_v13  ;;  %v1579_v26 = vrot.slane %v2174_v12, 4  ;;  %v2210_v30 = vunpack.c.l.bf16 %v1570_v17 }
   0x7   :  { %v2214_v31 = vsub.f32 %v1363_v4, %v3078_v22  ;;  %v1580_v32 = vrot.slane %v2179_v13, 4  ;;  %v1629_v33 = vcombine.low %v2174_v12, %v2179_v13  ;;  %v3076_v36 = vunpack.c.l.bf16 %v2200_v27 }
   0x8   :  { %v2221_v34 = vsub.f32 %v1364_v8, %v3077_v25  ;;  %v2223_v35 = vunpack.c.l.bf16 %v1579_v26  ;;  %v3075_v37 = vunpack.c.l.bf16 %v2205_v28  ;;  %v1632_v40 = vcombine.high %v2200_v27, %v2205_v28  ;;  %50 = vperm.xlu0 %1936, %v42_v29  }
   0x9   :  { %105 = vmatpush1.bf16.msra.mxu0 %v1627_v21  ;;  %v2230_v39 = vunpack.c.l.bf16 %v1580_v32  ;;  %v1581_v41 = vrot.slane %v2200_v27, 4  ;;  %v1582_v42 = vrot.slane %v2205_v28, 4  ;;  %v2240_v44 = vsub.f32 %v1365_v15, %v3076_v36 }
   0xa   :  { %106 = vmatprep.subr.bf16.mxu0 %v1630_v24  ;;  %v2244_v45 = vsub.f32 %v1366_v20, %v3075_v37  ;;  %v2258_v52 = vshrl.u32 %v147_v46, 7  ;;  %v1631_v55 = vcombine.low %v2200_v27, %v2205_v28 }
   0xb   :  { %v2248_v48 = vunpack.c.l.bf16 %v1581_v41  ;;  %v2250_v49 = vunpack.c.l.bf16 %v1582_v42 }
   0xc   :  { %879 = vperm.xlu0 %1936, %v861_v38   ;;  %v2267_v56 = vadd.s32 8, %v2258_v52  ;;  %v171_v57 = vsub.s32 1, %v2258_v52  ;;  %v179_v58 = vsub.s32 3, %v2258_v52  ;;  %v167_v59 = vsub.s32 0, %v2258_v52 }
   0xd   :  { %107 = vmatpush1.bf16.msra.mxu0 %v1629_v33  ;;  %v175_v60 = vsub.s32 2, %v2258_v52  ;;  %v2274_v61 = vadd.s32 16, %v2258_v52 }
   0xe   :  { %108 = vmatprep.subr.bf16.mxu0 %v1632_v40 }
   0xf   :  { %13 = vsyncpa [#allocation3], 0  ;;  %v1946_v62 = vld [vmem:[%s3067_s2] sm:$0xff]   ;;  %v2281_v63 = vrot.slane %v164_v50, %v171_v57  ;;  %v2285_v0 = vrot.slane %v164_v50, %v179_v58  ;;  %v2289_v1 = vrot.slane %v164_v50, %v167_v59  ;;  %v2292_v2 = vadd.s32 24, %v2258_v52  ;;  %v865_v4 = vld [vmem:[%s3070_s5 + $0x30] sm:$0xff] }
  0x10   :  { %vm3074_vm0 = vcmask 523264   ;;  %889 = vperm.xlu0 %1936, %v863_v51   ;;  %v2296_v3 = vrot.slane %v164_v50, %v175_v60  ;;  %v2108_v5 = vmov 1.0|1.0   ;;  %v2324_v6 = vadd.s32 32, %v2258_v52  ;;  %v1029_v9 = vld [vmem:[%s3072_s7] sm:$0xff]  ;;  %v1031_v15 = vld [vmem:[%s3072_s7 + $0x10] sm:$0xff] }
  0x11   :  { %109 = vmatpush1.bf16.msra.mxu0 %v1631_v55  ;;  %vm182_vm1 = vcmp.eq.s32.totalorder %v2258_v52, %v2281_v63  ;;  %vm186_vm2 = vcmp.eq.s32.totalorder %v2267_v56, %v2281_v63  ;;  %vm184_vm3 = vcmp.eq.s32.totalorder %v2258_v52, %v2285_v0  ;;  %vm188_vm4 = vcmp.eq.s32.totalorder %v2267_v56, %v2285_v0  ;;  %v1033_v18 = vld [vmem:[%s3072_s7 + $0x20] sm:$0xff]  ;;  %v1035_v24 = vld [vmem:[%s3072_s7 + $0x30] sm:$0xff] }
  0x12   :  { %vm1698_vm5 = vmpackc.low %vm186_vm2, %vm182_vm1  ;;  %vm181_vm6 = vcmp.eq.s32.totalorder %v2258_v52, %v2289_v1  ;;  %vm185_vm7 = vcmp.eq.s32.totalorder %v2267_v56, %v2289_v1  ;;  %vm183_vm8 = vcmp.eq.s32.totalorder %v2258_v52, %v2296_v3  ;;  %vm187_vm9 = vcmp.eq.s32.totalorder %v2267_v56, %v2296_v3  ;;  %v1762_v38 = vld [vmem:[%s3066_s1 + $0x4] sm:$0xf] }
  0x13   :  { %1699 = vmatprep.subr.msk.bf16.mxu1 %vm1698_vm5, %v2108_v5  ;;  %vm1730_vm10 = vmpackc.low %vm188_vm4, %vm184_vm3  ;;  %vm190_vm11 = vcmp.eq.s32.totalorder %v2274_v61, %v2281_v63  ;;  %vm194_vm12 = vcmp.eq.s32.totalorder %v2292_v2, %v2281_v63  ;;  %v2327_v8 = vadd.s32 40, %v2258_v52  ;;  %vm192_vm14 = vcmp.eq.s32.totalorder %v2274_v61, %v2285_v0 }
  0x14   :  { %1633 = vmatmul.mubr.msk.bf16.vlgmr.msra.gmra.mrb[0].mxu0 %vm3074_vm0, %v1946_v62  ;;  %899 = vperm.xlu0 %1936, %v865_v4   ;;  %vm1700_vm13 = vmpackc.low %vm185_vm7, %vm181_vm6  ;;  %vm196_vm15 = vcmp.eq.s32.totalorder %v2292_v2, %v2285_v0  ;;  %vm189_vm2 = vcmp.eq.s32.totalorder %v2274_v61, %v2289_v1  ;;  %vm193_vm3 = vcmp.eq.s32.totalorder %v2292_v2, %v2289_v1  ;;  %v2362_v10 = vadd.s32 48, %v2258_v52 }
  0x15   :  { %1731 = vmatprep.subr.msk.bf16.mxu0 %vm1730_vm10, %v2108_v5  ;;  %1701 = vmatpush1.bf16.msk.msra.mxu1 %vm1700_vm13, %v2108_v5  ;;  %vm1732_vm1 = vmpackc.low %vm187_vm9, %vm183_vm8  ;;  %vm191_vm5 = vcmp.eq.s32.totalorder %v2274_v61, %v2296_v3  ;;  %vm195_vm6 = vcmp.eq.s32.totalorder %v2292_v2, %v2296_v3  ;;  %vm198_vm8 = vcmp.eq.s32.totalorder %v2324_v6, %v2281_v63  ;;  %v2365_v11 = vadd.s32 56, %v2258_v52 }
  0x16   :  { %1733 = vmatpush1.bf16.msk.msra.mxu0 %vm1732_vm1, %v2108_v5  ;;  %vm1702_vm4 = vmpackc.low %vm194_vm12, %vm190_vm11  ;;  %vm202_vm9 = vcmp.eq.s32.totalorder %v2327_v8, %v2281_v63  ;;  %vm200_vm11 = vcmp.eq.s32.totalorder %v2324_v6, %v2285_v0  ;;  %vm204_vm12 = vcmp.eq.s32.totalorder %v2327_v8, %v2285_v0  ;;  %480 = vmatprep.mubr.bf16.mxu0 %v2107_v7  ;;  %v2401_v16 = vadd.s32 64, %v2258_v52 }
  0x17   :  { %1703 = vmatprep.subr.msk.bf16.mxu1 %vm1702_vm4, %v2108_v5  ;;  %vm1734_vm7 = vmpackc.low %vm196_vm15, %vm192_vm14  ;;  %vm197_vm14 = vcmp.eq.s32.totalorder %v2324_v6, %v2289_v1  ;;  %vm201_vm15 = vcmp.eq.s32.totalorder %v2327_v8, %v2289_v1  ;;  %v2404_v17 = vadd.s32 72, %v2258_v52  ;;  %v2439_v20 = vadd.s32 80, %v2258_v52 }
  0x18   :  { %1039 = vperm.xlu0 %1936, %v1029_v9   ;;  %1735 = vmatprep.subr.msk.bf16.mxu0 %vm1734_vm7, %v2108_v5  ;;  %vm1704_vm10 = vmpackc.low %vm193_vm3, %vm189_vm2  ;;  %vm199_vm2 = vcmp.eq.s32.totalorder %v2324_v6, %v2296_v3  ;;  %vm203_vm3 = vcmp.eq.s32.totalorder %v2327_v8, %v2296_v3  ;;  %v2442_v21 = vadd.s32 88, %v2258_v52  ;;  %v2474_v26 = vadd.s32 96, %v2258_v52 }
  0x19   :  { %1705 = vmatpush1.bf16.msk.msra.mxu1 %vm1704_vm10, %v2108_v5  ;;  %vm1736_vm13 = vmpackc.low %vm195_vm6, %vm191_vm5  ;;  %vm206_vm5 = vcmp.eq.s32.totalorder %v2362_v10, %v2281_v63  ;;  %vm210_vm6 = vcmp.eq.s32.totalorder %v2365_v11, %v2281_v63  ;;  %v2477_v29 = vadd.s32 104, %v2258_v52  ;;  %v162_v32 = vadd.s32 112, %v2258_v52 }
  0x1a   :  { %1737 = vmatpush1.bf16.msk.msra.mxu0 %vm1736_vm13, %v2108_v5  ;;  %vm1706_vm1 = vmpackc.low %vm202_vm9, %vm198_vm8  ;;  %vm208_vm8 = vcmp.eq.s32.totalorder %v2362_v10, %v2285_v0  ;;  %vm212_vm9 = vcmp.eq.s32.totalorder %v2365_v11, %v2285_v0  ;;  %v163_v33 = vadd.s32 120, %v2258_v52  ;;  %v2534_v40 = vrot.slane %v1762_v38, %v171_v57 }
  0x1b   :  { %1707 = vmatprep.subr.msk.bf16.mxu1 %vm1706_vm1, %v2108_v5  ;;  %vm1738_vm4 = vmpackc.low %vm204_vm12, %vm200_vm11  ;;  %vm205_vm11 = vcmp.eq.s32.totalorder %v2362_v10, %v2289_v1  ;;  %vm209_vm12 = vcmp.eq.s32.totalorder %v2365_v11, %v2289_v1  ;;  %v2538_v41 = vrot.slane %v1762_v38, %v179_v58  ;;  %v2555_v42 = vrot.slane %v1762_v38, %v167_v59 }
  0x1c   :  { %1049 = vperm.xlu0 %1936, %v1031_v15   ;;  %1739 = vmatprep.subr.msk.bf16.mxu0 %vm1738_vm4, %v2108_v5  ;;  %vm1708_vm7 = vmpackc.low %vm201_vm15, %vm197_vm14  ;;  %vm207_vm14 = vcmp.eq.s32.totalorder %v2362_v10, %v2296_v3  ;;  %vm211_vm15 = vcmp.eq.s32.totalorder %v2365_v11, %v2296_v3  ;;  %v2559_v46 = vrot.slane %v1762_v38, %v175_v60  ;;  %v3079_v50 = vmov 0 }
  0x1d   :  { %1709 = vmatpush1.bf16.msk.msra.mxu1 %vm1708_vm7, %v2108_v5  ;;  %vm1740_vm10 = vmpackc.low %vm203_vm3, %vm199_vm2  ;;  %vm214_vm2 = vcmp.eq.s32.totalorder %v2401_v16, %v2281_v63  ;;  %vm218_vm3 = vcmp.eq.s32.totalorder %v2404_v17, %v2281_v63  ;;  %v3081_v51 = vmov 0  ;;  %v3083_v55 = vmov 0 }
  0x1e   :  { %1741 = vmatpush1.bf16.msk.msra.mxu0 %vm1740_vm10, %v2108_v5  ;;  %vm1710_vm13 = vmpackc.low %vm210_vm6, %vm206_vm5  ;;  %vm216_vm5 = vcmp.eq.s32.totalorder %v2401_v16, %v2285_v0  ;;  %vm220_vm6 = vcmp.eq.s32.totalorder %v2404_v17, %v2285_v0  ;;  %v3085_v57 = vmov 0  ;;  %vm531_vm0 = vcmp.eq.s32.totalorder %v2274_v61, %v2559_v46 }
  0x1f   :  { %1711 = vmatprep.subr.msk.bf16.mxu1 %vm1710_vm13, %v2108_v5  ;;  %vm1742_vm1 = vmpackc.low %vm212_vm9, %vm208_vm8  ;;  %vm213_vm8 = vcmp.eq.s32.totalorder %v2401_v16, %v2289_v1  ;;  %vm217_vm9 = vcmp.eq.s32.totalorder %v2404_v17, %v2289_v1 }
  0x20   :  { %1059 = vperm.xlu0 %1936, %v1033_v18   ;;  %1743 = vmatprep.subr.msk.bf16.mxu0 %vm1742_vm1, %v2108_v5  ;;  %vm1712_vm4 = vmpackc.low %vm209_vm12, %vm205_vm11  ;;  %vm215_vm11 = vcmp.eq.s32.totalorder %v2401_v16, %v2296_v3  ;;  %vm219_vm12 = vcmp.eq.s32.totalorder %v2404_v17, %v2296_v3 }
  0x21   :  { %1713 = vmatpush1.bf16.msk.msra.mxu1 %vm1712_vm4, %v2108_v5  ;;  %vm1744_vm7 = vmpackc.low %vm211_vm15, %vm207_vm14  ;;  %vm222_vm14 = vcmp.eq.s32.totalorder %v2439_v20, %v2281_v63  ;;  %vm226_vm15 = vcmp.eq.s32.totalorder %v2442_v21, %v2281_v63 }
  0x22   :  { %1745 = vmatpush1.bf16.msk.msra.mxu0 %vm1744_vm7, %v2108_v5  ;;  %vm1714_vm10 = vmpackc.low %vm218_vm3, %vm214_vm2  ;;  %vm224_vm2 = vcmp.eq.s32.totalorder %v2439_v20, %v2285_v0  ;;  %vm228_vm3 = vcmp.eq.s32.totalorder %v2442_v21, %v2285_v0 }
  0x23   :  { %1715 = vmatprep.subr.msk.bf16.mxu1 %vm1714_vm10, %v2108_v5  ;;  %vm1746_vm13 = vmpackc.low %vm220_vm6, %vm216_vm5  ;;  %vm221_vm5 = vcmp.eq.s32.totalorder %v2439_v20, %v2289_v1  ;;  %vm225_vm6 = vcmp.eq.s32.totalorder %v2442_v21, %v2289_v1 }
  0x24   :  { %1069 = vperm.xlu0 %1936, %v1035_v24   ;;  %1747 = vmatprep.subr.msk.bf16.mxu0 %vm1746_vm13, %v2108_v5  ;;  %vm1716_vm1 = vmpackc.low %vm217_vm9, %vm213_vm8  ;;  %vm223_vm8 = vcmp.eq.s32.totalorder %v2439_v20, %v2296_v3  ;;  %vm227_vm9 = vcmp.eq.s32.totalorder %v2442_v21, %v2296_v3 }
  0x25   :  { %1717 = vmatpush1.bf16.msk.msra.mxu1 %vm1716_vm1, %v2108_v5  ;;  %vm1748_vm4 = vmpackc.low %vm219_vm12, %vm215_vm11  ;;  %vm230_vm11 = vcmp.eq.s32.totalorder %v2474_v26, %v2281_v63  ;;  %vm234_vm12 = vcmp.eq.s32.totalorder %v2477_v29, %v2281_v63 }
  0x26   :  { %1749 = vmatpush1.bf16.msk.msra.mxu0 %vm1748_vm4, %v2108_v5  ;;  %vm1718_vm7 = vmpackc.low %vm226_vm15, %vm222_vm14  ;;  %vm232_vm14 = vcmp.eq.s32.totalorder %v2474_v26, %v2285_v0  ;;  %vm236_vm15 = vcmp.eq.s32.totalorder %v2477_v29, %v2285_v0 }
  0x27   :  { %1719 = vmatprep.subr.msk.bf16.mxu1 %vm1718_vm7, %v2108_v5  ;;  %vm1750_vm10 = vmpackc.low %vm228_vm3, %vm224_vm2  ;;  %vm229_vm2 = vcmp.eq.s32.totalorder %v2474_v26, %v2289_v1  ;;  %vm233_vm3 = vcmp.eq.s32.totalorder %v2477_v29, %v2289_v1 }
  0x28   :  { %1751 = vmatprep.subr.msk.bf16.mxu0 %vm1750_vm10, %v2108_v5  ;;  %vm1720_vm13 = vmpackc.low %vm225_vm6, %vm221_vm5  ;;  %vm231_vm5 = vcmp.eq.s32.totalorder %v2474_v26, %v2296_v3  ;;  %vm235_vm6 = vcmp.eq.s32.totalorder %v2477_v29, %v2296_v3  ;;  %vm238_vm10 = vcmp.eq.s32.totalorder %v162_v32, %v2281_v63 }
  0x29   :  { %1721 = vmatpush1.bf16.msk.msra.mxu1 %vm1720_vm13, %v2108_v5  ;;  %vm1752_vm1 = vmpackc.low %vm227_vm9, %vm223_vm8  ;;  %vm244_vm13 = vcmp.eq.s32.totalorder %v163_v33, %v2285_v0 }
  0x2a   :  { %1753 = vmatpush1.bf16.msk.msra.mxu0 %vm1752_vm1, %v2108_v5  ;;  %vm1722_vm4 = vmpackc.low %vm234_vm12, %vm230_vm11  ;;  %vm242_vm11 = vcmp.eq.s32.totalorder %v163_v33, %v2281_v63  ;;  %vm240_vm12 = vcmp.eq.s32.totalorder %v162_v32, %v2285_v0  ;;  %vm241_vm1 = vcmp.eq.s32.totalorder %v163_v33, %v2289_v1 }
  0x2b   :  { %1723 = vmatprep.subr.msk.bf16.mxu1 %vm1722_vm4, %v2108_v5  ;;  %vm1754_vm7 = vmpackc.low %vm236_vm15, %vm232_vm14  ;;  %vm237_vm15 = vcmp.eq.s32.totalorder %v162_v32, %v2289_v1 }
  0x2c   :  { %1755 = vmatprep.subr.msk.bf16.mxu0 %vm1754_vm7, %v2108_v5  ;;  %vm1724_vm8 = vmpackc.low %vm233_vm3, %vm229_vm2  ;;  %vm239_vm2 = vcmp.eq.s32.totalorder %v162_v32, %v2296_v3  ;;  %vm243_vm3 = vcmp.eq.s32.totalorder %v163_v33, %v2296_v3  ;;  %vm522_vm7 = vcmp.eq.s32.totalorder %v2258_v52, %v2534_v40 }
  0x2d   :  { %1725 = vmatpush1.bf16.msk.msra.mxu1 %vm1724_vm8, %v2108_v5  ;;  %vm1756_vm9 = vmpackc.low %vm235_vm6, %vm231_vm5  ;;  %vm526_vm8 = vcmp.eq.s32.totalorder %v2267_v56, %v2534_v40 }
  0x2e   :  { %1757 = vmatpush1.bf16.msk.msra.mxu0 %vm1756_vm9, %v2108_v5  ;;  %vm1726_vm14 = vmpackc.low %vm242_vm11, %vm238_vm10  ;;  %vm524_vm9 = vcmp.eq.s32.totalorder %v2258_v52, %v2538_v41  ;;  %vm528_vm10 = vcmp.eq.s32.totalorder %v2267_v56, %v2538_v41 }
  0x2f   :  { %1727 = vmatprep.subr.msk.bf16.mxu1 %vm1726_vm14, %v2108_v5  ;;  %vm1758_vm4 = vmpackc.low %vm244_vm13, %vm240_vm12  ;;  %vm578_vm13 = vcmp.eq.s32.totalorder %v162_v32, %v2534_v40  ;;  %vm582_vm14 = vcmp.eq.s32.totalorder %v163_v33, %v2534_v40 }
  0x30   :  { %1759 = vmatprep.subr.msk.bf16.mxu0 %vm1758_vm4, %v2108_v5  ;;  %vm1728_vm5 = vmpackc.low %vm241_vm1, %vm237_vm15  ;;  %vm580_vm1 = vcmp.eq.s32.totalorder %v162_v32, %v2538_v41  ;;  %vm581_vm4 = vcmp.eq.s32.totalorder %v163_v33, %v2555_v42 }
  0x31   :  { %1729 = vmatpush1.bf16.msk.msra.mxu1 %vm1728_vm5, %v2108_v5  ;;  %vm1760_vm6 = vmpackc.low %vm243_vm3, %vm239_vm2  ;;  %vm584_vm2 = vcmp.eq.s32.totalorder %v163_v33, %v2538_v41  ;;  %vm577_vm3 = vcmp.eq.s32.totalorder %v162_v32, %v2555_v42 }
  0x32   :  { %1761 = vmatpush1.bf16.msk.msra.mxu0 %vm1760_vm6, %v2108_v5  ;;  %vm1827_vm11 = vmpackc.low %vm526_vm8, %vm522_vm7  ;;  %vm579_vm6 = vcmp.eq.s32.totalorder %v162_v32, %v2559_v46  ;;  %vm583_vm7 = vcmp.eq.s32.totalorder %v163_v33, %v2559_v46  ;;  %v3099_v33 = vmov 0 }
  0x33   :  { %1828 = vmatprep.subr.msk.bf16.mxu1 %vm1827_vm11, %v2108_v5  ;;  %vm1859_vm12 = vmpackc.low %vm528_vm10, %vm524_vm9  ;;  %vm521_vm10 = vcmp.eq.s32.totalorder %v2258_v52, %v2555_v42  ;;  %vm525_vm11 = vcmp.eq.s32.totalorder %v2267_v56, %v2555_v42 }
  0x34   :  { %1860 = vmatprep.subr.msk.bf16.mxu0 %vm1859_vm12, %v2108_v5  ;;  %vm2563_vm15 = vmpackc.low %vm582_vm14, %vm578_vm13  ;;  %vm523_vm12 = vcmp.eq.s32.totalorder %v2258_v52, %v2559_v46  ;;  %vm527_vm13 = vcmp.eq.s32.totalorder %v2267_v56, %v2559_v46  ;;  %vm530_vm14 = vcmp.eq.s32.totalorder %v2274_v61, %v2534_v40 }
  0x35   :  { %v3080_v50 = vsel %vm2563_vm15, 4294967295, %v3079_v50  ;;  %vm2571_vm5 = vmpackc.low %vm584_vm2, %vm580_vm1  ;;  %vm534_vm1 = vcmp.eq.s32.totalorder %v2292_v2, %v2534_v40  ;;  %vm550_vm15 = vcmp.eq.s32.totalorder %v2365_v11, %v2534_v40 }
  0x36   :  { %v3082_v51 = vsel %vm2571_vm5, 4294967295, %v3081_v51  ;;  %vm2577_vm8 = vmpackc.low %vm581_vm4, %vm577_vm3  ;;  %vm532_vm3 = vcmp.eq.s32.totalorder %v2274_v61, %v2538_v41  ;;  %vm536_vm4 = vcmp.eq.s32.totalorder %v2292_v2, %v2538_v41  ;;  %vm546_vm5 = vcmp.eq.s32.totalorder %v2362_v10, %v2534_v40 }
  0x37   :  { %v3084_v55 = vsel %vm2577_vm8, 4294967295, %v3083_v55  ;;  %vm2581_vm9 = vmpackc.low %vm583_vm7, %vm579_vm6  ;;  %vm529_vm7 = vcmp.eq.s32.totalorder %v2274_v61, %v2555_v42  ;;  %vm542_vm8 = vcmp.eq.s32.totalorder %v2327_v8, %v2534_v40 }
  0x38   :  { %v3086_v57 = vsel %vm2581_vm9, 4294967295, %v3085_v57  ;;  %vm2597_vm2 = vmpackc.low %vm525_vm11, %vm521_vm10  ;;  %vm533_vm10 = vcmp.eq.s32.totalorder %v2292_v2, %v2555_v42  ;;  %vm538_vm9 = vcmp.eq.s32.totalorder %v2324_v6, %v2534_v40 }
  0x39   :  { %vm2605_vm6 = vmpackc.low %vm527_vm13, %vm523_vm12  ;;  %vm535_vm12 = vcmp.eq.s32.totalorder %v2292_v2, %v2559_v46 }
  0x3a   :  { %vm2615_vm11 = vmpackc.low %vm534_vm1, %vm530_vm14  ;;  %vm540_vm1 = vcmp.eq.s32.totalorder %v2324_v6, %v2538_v41 }
  0x3b   :  { %vm1863_vm13 = vmpackc.low %vm536_vm4, %vm532_vm3  ;;  %vm544_vm3 = vcmp.eq.s32.totalorder %v2327_v8, %v2538_v41 }
  0x3c   :  { %vm2631_vm14 = vmpackc.low %vm533_vm10, %vm529_vm7  ;;  %vm537_vm7 = vcmp.eq.s32.totalorder %v2324_v6, %v2555_v42  ;;  %vm541_vm10 = vcmp.eq.s32.totalorder %v2327_v8, %v2555_v42 }
  0x3d   :  { %vm2645_vm4 = vmpackc.low %vm535_vm12, %vm531_vm0  ;;  %vm539_vm0 = vcmp.eq.s32.totalorder %v2324_v6, %v2559_v46  ;;  %v3101_v6 = vmov 0 }
  0x3e   :  { %vm1867_vm12 = vmpackc.low %vm544_vm3, %vm540_vm1  ;;  %vm545_vm1 = vcmp.eq.s32.totalorder %v2362_v10, %v2555_v42  ;;  %vm549_vm3 = vcmp.eq.s32.totalorder %v2365_v11, %v2555_v42 }
  0x83   :  { %v46_v58 = vpop.permute.xlu0 %45 }
  0x87   :  { %v51_v62 = vpop.permute.xlu0 %50 }
  0xe7   :  { %v136_v59 = vpop.f32.mrb[0].mxu0 }
  0xe8   :  { %v138_v60 = vpop.f32.mrb[1].mxu0  ;;  %v137_v0 = vadd.f32 %v136_v59, %v46_v58 }
  0xe9   :  { %v140_v63 = vpop.f32.mrb[2].mxu0  ;;  %v139_v52 = vadd.f32 %v138_v60, %v46_v58 }
  0xea   :  { %v141_v1 = vadd.f32 %v140_v63, %v51_v62  ;;  %v142_v3 = vpop.f32.mrb[3].mxu0 }
  0xeb   :  { %v143_v56 = vadd.f32 %v142_v3, %v51_v62 }
  0xec   :  { %v2613_v15 = vpack.c.bf16 %v141_v1, %v137_v0 }
  0xed   :  { %v2623_v24 = vpack.c.bf16 %v143_v56, %v139_v52 }
  0xee   :  { %438 = vmatmul.mubr.bf16.vlgmr.msra.gmra.mrb[0].mxu1 %v2613_v15  ;;  %481 = vmatmul.mubr.bf16.vlgmr.msra.gmra.mrb[4].mxu0 %v2613_v15 }
  0xef   :  { %1830 = vmatpush1.bf16.msk.msra.mxu1 %vm2597_vm2, %v2108_v5  ;;  %1862 = vmatpush1.bf16.msk.msra.mxu0 %vm2605_vm6, %v2108_v5  ;;  %vm2657_vm2 = vmpackc.low %vm542_vm8, %vm538_vm9  ;;  %vm543_vm6 = vcmp.eq.s32.totalorder %v2327_v8, %v2559_v46  ;;  %vm548_vm9 = vcmp.eq.s32.totalorder %v2362_v10, %v2538_v41  ;;  %v3104_v8 = vmov 0 }
  0xf0   :  { %1832 = vmatprep.subr.msk.bf16.mxu1 %vm2615_vm11, %v2108_v5  ;;  %1864 = vmatprep.subr.msk.bf16.mxu0 %vm1863_vm13, %v2108_v5  ;;  %vm2671_vm8 = vmpackc.low %vm541_vm10, %vm537_vm7  ;;  %vm552_vm11 = vcmp.eq.s32.totalorder %v2365_v11, %v2538_v41 }
  0xf1   :  { %777 = vmatprep.mubr.bf16.mxu1 %v2107_v7  ;;  %820 = vmatprep.mubr.bf16.mxu0 %v2107_v7  ;;  %v3100_v33 = vsel %vm2671_vm8, 4294967295, %v3099_v33  ;;  %vm1869_vm13 = vmpackc.low %vm543_vm6, %vm539_vm0  ;;  %vm554_vm0 = vcmp.eq.s32.totalorder %v2401_v16, %v2534_v40  ;;  %vm558_vm6 = vcmp.eq.s32.totalorder %v2404_v17, %v2534_v40 }
  0xf2   :  { %vm1839_vm7 = vmpackc.low %vm550_vm15, %vm546_vm5  ;;  %vm556_vm15 = vcmp.eq.s32.totalorder %v2401_v16, %v2538_v41  ;;  %vm560_vm5 = vcmp.eq.s32.totalorder %v2404_v17, %v2538_v41 }
  0xf3   :  { %1834 = vmatpush1.bf16.msk.msra.mxu1 %vm2631_vm14, %v2108_v5  ;;  %1866 = vmatpush1.bf16.msk.msra.mxu0 %vm2645_vm4, %v2108_v5  ;;  %vm547_vm14 = vcmp.eq.s32.totalorder %v2362_v10, %v2559_v46  ;;  %vm551_vm4 = vcmp.eq.s32.totalorder %v2365_v11, %v2559_v46  ;;  %vm1871_vm10 = vmpackc.low %vm552_vm11, %vm548_vm9  ;;  %vm553_vm9 = vcmp.eq.s32.totalorder %v2401_v16, %v2555_v42  ;;  %v859_v10 = vld [vmem:[%s3070_s5] sm:$0xff]  ;;  %v862_v11 = vld [vmem:[%s3070_s5 + $0x18] sm:$0xff] }
  0xf4   :  { %1836 = vmatprep.subr.msk.bf16.mxu1 %vm2657_vm2, %v2108_v5  ;;  %1868 = vmatprep.subr.msk.bf16.mxu0 %vm1867_vm12, %v2108_v5  ;;  %vm2701_vm8 = vmpackc.low %vm549_vm3, %vm545_vm1  ;;  %vm3103_vm2 = vnez %v3100_v33  ;;  %vm557_vm11 = vcmp.eq.s32.totalorder %v2404_v17, %v2555_v42  ;;  %vm555_vm3 = vcmp.eq.s32.totalorder %v2401_v16, %v2559_v46  ;;  %v864_v16 = vld [vmem:[%s3070_s5 + $0x28] sm:$0xff] }
  0xf5   :  { %v3102_v6 = vsel %vm2701_vm8, 4294967295, %v3101_v6  ;;  %vm1873_vm12 = vmpackc.low %vm551_vm4, %vm547_vm14  ;;  %vm566_vm14 = vcmp.eq.s32.totalorder %v2442_v21, %v2534_v40  ;;  %869 = vperm.xlu1 %1937, %v859_v10  }
  0xf6   :  { %vm1843_vm1 = vmpackc.low %vm558_vm6, %vm554_vm0  ;;  %vm3106_vm0 = vnez %v3102_v6 }
  0xf7   :  { %1838 = vmatpush1.bf16.msk.msra.mxu1 %vm3103_vm2, %v2108_v5  ;;  %1870 = vmatpush1.bf16.msk.msra.mxu0 %vm1869_vm13, %v2108_v5  ;;  %vm559_vm2 = vcmp.eq.s32.totalorder %v2404_v17, %v2559_v46  ;;  %vm1875_vm8 = vmpackc.low %vm560_vm5, %vm556_vm15  ;;  %vm562_vm13 = vcmp.eq.s32.totalorder %v2439_v20, %v2534_v40  ;;  %vm561_vm15 = vcmp.eq.s32.totalorder %v2439_v20, %v2555_v42  ;;  %v866_v17 = vld [vmem:[%s3070_s5 + $0x38] sm:$0xff] }
  0xf8   :  { %1840 = vmatprep.subr.msk.bf16.mxu1 %vm1839_vm7, %v2108_v5  ;;  %1872 = vmatprep.subr.msk.bf16.mxu0 %vm1871_vm10, %v2108_v5  ;;  %vm2727_vm4 = vmpackc.low %vm557_vm11, %vm553_vm9  ;;  %vm564_vm7 = vcmp.eq.s32.totalorder %v2439_v20, %v2538_v41  ;;  %vm568_vm10 = vcmp.eq.s32.totalorder %v2442_v21, %v2538_v41  ;;  %vm565_vm5 = vcmp.eq.s32.totalorder %v2442_v21, %v2555_v42 }
  0xf9   :  { %v3105_v8 = vsel %vm2727_vm4, 4294967295, %v3104_v8  ;;  %vm1877_vm6 = vmpackc.low %vm559_vm2, %vm555_vm3  ;;  %vm563_vm11 = vcmp.eq.s32.totalorder %v2439_v20, %v2559_v46  ;;  %vm574_vm3 = vcmp.eq.s32.totalorder %v2477_v29, %v2534_v40  ;;  %v1030_v20 = vld [vmem:[%s3072_s7 + $0x8] sm:$0xff] }
  0xfa   :  { %vm1847_vm9 = vmpackc.low %vm566_vm14, %vm562_vm13  ;;  %vm3107_vm13 = vnez %v3105_v8 }
  0xfb   :  { %1842 = vmatpush1.bf16.msk.msra.mxu1 %vm3106_vm0, %v2108_v5  ;;  %1874 = vmatpush1.bf16.msk.msra.mxu0 %vm1873_vm12, %v2108_v5  ;;  %vm567_vm0 = vcmp.eq.s32.totalorder %v2442_v21, %v2559_v46  ;;  %vm1879_vm4 = vmpackc.low %vm568_vm10, %vm564_vm7  ;;  %vm570_vm12 = vcmp.eq.s32.totalorder %v2474_v26, %v2534_v40  ;;  %vm569_vm10 = vcmp.eq.s32.totalorder %v2474_v26, %v2555_v42  ;;  %v1032_v21 = vld [vmem:[%s3072_s7 + $0x18] sm:$0xff] }
  0xfc   :  { %1844 = vmatprep.subr.msk.bf16.mxu1 %vm1843_vm1, %v2108_v5  ;;  %1876 = vmatprep.subr.msk.bf16.mxu0 %vm1875_vm8, %v2108_v5  ;;  %vm1849_vm2 = vmpackc.low %vm565_vm5, %vm561_vm15  ;;  %vm572_vm1 = vcmp.eq.s32.totalorder %v2474_v26, %v2538_v41  ;;  %vm576_vm8 = vcmp.eq.s32.totalorder %v2477_v29, %v2538_v41  ;;  %vm573_vm15 = vcmp.eq.s32.totalorder %v2477_v29, %v2555_v42 }
  0xfd   :  { %vm1881_vm14 = vmpackc.low %vm567_vm0, %vm563_vm11  ;;  %vm3108_vm11 = vnez %v3080_v50  ;;  %vm3109_vm0 = vnez %v3082_v51 }
  0xfe   :  { %vm1851_vm7 = vmpackc.low %vm574_vm3, %vm570_vm12  ;;  %vm3110_vm12 = vnez %v3084_v55  ;;  %vm3111_vm3 = vnez %v3086_v57 }
  0xff   :  { %1846 = vmatpush1.bf16.msk.msra.mxu1 %vm3107_vm13, %v2108_v5  ;;  %1878 = vmatpush1.bf16.msk.msra.mxu0 %vm1877_vm6, %v2108_v5  ;;  %vm1883_vm5 = vmpackc.low %vm576_vm8, %vm572_vm1  ;;  %vm571_vm13 = vcmp.eq.s32.totalorder %v2474_v26, %v2559_v46  ;;  %vm575_vm6 = vcmp.eq.s32.totalorder %v2477_v29, %v2559_v46  ;;  %v1034_v26 = vld [vmem:[%s3072_s7 + $0x28] sm:$0xff]  ;;  %v1036_v29 = vld [vmem:[%s3072_s7 + $0x38] sm:$0xff]  ;;  %vm3112_vm1 = vcmask 523264  }
 0x100   :  { %1848 = vmatprep.subr.msk.bf16.mxu1 %vm1847_vm9, %v2108_v5  ;;  %1880 = vmatprep.subr.msk.bf16.mxu0 %vm1879_vm4, %v2108_v5  ;;  %vm1853_vm9 = vmpackc.low %vm573_vm15, %vm569_vm10 }
 0x101   :  { %vm1885_vm4 = vmpackc.low %vm575_vm6, %vm571_vm13 }
 0x102   :  { %vm3113_vm8 = vmmov %vm3112_vm1 }
 0x103   :  { %1850 = vmatpush1.bf16.msk.msra.mxu1 %vm1849_vm2, %v2108_v5  ;;  %1882 = vmatpush1.bf16.msk.msra.mxu0 %vm1881_vm14, %v2108_v5  ;;  %vm927_vm2 = vcmask 654336   ;;  %vm3114_vm14 = vmmov %vm3112_vm1 }
 0x104   :  { %1852 = vmatprep.subr.msk.bf16.mxu1 %vm1851_vm7, %v2108_v5  ;;  %1884 = vmatprep.subr.msk.bf16.mxu0 %vm1883_vm5, %v2108_v5  ;;  %vm3115_vm7 = vmmov %vm3112_vm1 }
 0x107   :  { %1854 = vmatpush1.bf16.msk.msra.mxu1 %vm1853_vm9, %v2108_v5  ;;  %1886 = vmatpush1.bf16.msk.msra.mxu0 %vm1885_vm4, %v2108_v5 }
 0x108   :  { %1856 = vmatprep.subr.msk.bf16.mxu1 %vm3108_vm11, %v2108_v5  ;;  %1888 = vmatprep.subr.msk.bf16.mxu0 %vm3109_vm0, %v2108_v5 }
 0x10b   :  { %1858 = vmatpush1.bf16.msk.msra.mxu1 %vm3110_vm12, %v2108_v5  ;;  %1890 = vmatpush1.bf16.msk.msra.mxu0 %vm3111_vm3, %v2108_v5  ;;  %v860_v5 = vld [vmem:[%s3070_s5 + $0x8] sm:$0xff] }
 0x10c   :  { %940 = vmatprep.subr.bf16.mxu1 %v2623_v24  ;;  %874 = vperm.xlu1 %1937, %v860_v5  }
 0x10e   :  { %778 = vmatmul.mubr.bf16.vlgmr.msra.gmra.mrb[4].mxu1 %v2623_v24  ;;  %821 = vmatmul.mubr.bf16.vlgmr.msra.gmra.mrb[8].mxu0 %v2623_v24 }
 0x10f   :  { %941 = vmatpush1.bf16.msra.mxu1 %v2613_v15  ;;  %972 = vmatprep.mubr.bf16.mxu1 %v2107_v7 }
 0x110   :  { %1141 = vmatprep.mubr.bf16.mxu0 %v2107_v7  ;;  %884 = vperm.xlu1 %1937, %v862_v11  }
 0x114   :  { %894 = vperm.xlu1 %1937, %v864_v16  }
 0x118   :  { %904 = vperm.xlu1 %1937, %v866_v17  }
 0x11c   :  { %1044 = vperm.xlu1 %1937, %v1030_v20  }
 0x120   :  { %1054 = vperm.xlu1 %1937, %v1032_v21  }
 0x124   :  { %1064 = vperm.xlu1 %1937, %v1034_v26  }
 0x128   :  { %1074 = vperm.xlu1 %1937, %v1036_v29  }
 0x1c1   :  { %v439_v38 = vpop.f32.mrb[0].mxu1  ;;  %v482_v40 = vpop.f32.mrb[4].mxu0 }
 0x1c2   :  { %v491_v41 = vadd.f32 %v482_v40, %v439_v38  ;;  %v495_v42 = vsub.f32 %v439_v38, %v482_v40  ;;  %v441_v46 = vpop.f32.mrb[1].mxu1  ;;  %v484_v50 = vpop.f32.mrb[5].mxu0 }
 0x1c3   :  { %v493_v51 = vadd.f32 %v484_v50, %v441_v46  ;;  %v499_v55 = vsub.f32 %v441_v46, %v484_v50  ;;  %v443_v57 = vpop.f32.mrb[2].mxu1  ;;  %v486_v58 = vpop.f32.mrb[6].mxu0 }
 0x1c4   :  { %v492_v59 = vadd.f32 %v486_v58, %v443_v57  ;;  %v496_v60 = vsub.f32 %v443_v57, %v486_v58  ;;  %v445_v62 = vpop.f32.mrb[3].mxu1  ;;  %v488_v63 = vpop.f32.mrb[7].mxu0  ;;  %v497_v3 = vand.u32 2147483647, %v495_v42  ;;  %v1947_v58 = vld [vmem:[%s3069_s4] sm:$0xff]  }
 0x1c5   :  { %v494_v0 = vadd.f32 %v488_v63, %v445_v62  ;;  %v500_v1 = vsub.f32 %v445_v62, %v488_v63  ;;  %v501_v56 = vand.u32 2147483647, %v499_v55  ;;  %v1950_v62 = vld [vmem:[%s3069_s4 + $0x18] sm:$0xff]   ;;  %v870_v63 = vpop.permute.xlu1 %869 }
 0x1c6   :  { %v498_v4 = vand.u32 2147483647, %v496_v60  ;;  %v843_v52 = vpack.c.bf16 %v492_v59, %v491_v41  ;;  %v1948_v59 = vld [vmem:[%s3069_s4 + $0x8] sm:$0xff]   ;;  %v1949_v60 = vld [vmem:[%s3069_s4 + $0x10] sm:$0xff]  }
 0x1c7   :  { %v502_v9 = vand.u32 2147483647, %v500_v1  ;;  %v845_v15 = vpack.c.bf16 %v494_v0, %v493_v51 }
 0x1c8   :  { %v847_v18 = vpack.c.bf16 %v498_v4, %v497_v3 }
 0x1c9   :  { %v849_v24 = vpack.c.bf16 %v502_v9, %v501_v56  ;;  %v875_v3 = vpop.permute.xlu1 %874 }
 0x1e1   :  { %v779_v32 = vpop.f32.mrb[4].mxu1  ;;  %v822_v61 = vpop.f32.mrb[8].mxu0 }
 0x1e2   :  { %v831_v2 = vadd.f32 %v822_v61, %v779_v32  ;;  %v835_v33 = vsub.f32 %v779_v32, %v822_v61  ;;  %v781_v6 = vpop.f32.mrb[5].mxu1  ;;  %v824_v8 = vpop.f32.mrb[9].mxu0 }
 0x1e3   :  { %v833_v10 = vadd.f32 %v824_v8, %v781_v6  ;;  %v839_v5 = vsub.f32 %v781_v6, %v824_v8  ;;  %v783_v11 = vpop.f32.mrb[6].mxu1  ;;  %v826_v16 = vpop.f32.mrb[10].mxu0 }
 0x1e4   :  { %v832_v17 = vadd.f32 %v826_v16, %v783_v11  ;;  %v836_v20 = vsub.f32 %v783_v11, %v826_v16  ;;  %v785_v21 = vpop.f32.mrb[7].mxu1  ;;  %v828_v26 = vpop.f32.mrb[11].mxu0  ;;  %v837_v40 = vand.u32 2147483647, %v835_v33 }
 0x1e5   :  { %v834_v29 = vadd.f32 %v828_v26, %v785_v21  ;;  %v840_v38 = vsub.f32 %v785_v21, %v828_v26  ;;  %v841_v46 = vand.u32 2147483647, %v839_v5  ;;  %v885_v6 = vpop.permute.xlu1 %884 }
 0x1e6   :  { %v838_v41 = vand.u32 2147483647, %v836_v20  ;;  %v844_v42 = vpack.c.bf16 %v832_v17, %v831_v2  ;;  %v880_v2 = vpop.permute.xlu0 %879 }
 0x1e7   :  { %v842_v50 = vand.u32 2147483647, %v840_v38  ;;  %v846_v51 = vpack.c.bf16 %v834_v29, %v833_v10 }
 0x1e8   :  { %942 = vmatprep.subr.bf16.mxu1 %v844_v42  ;;  %v848_v55 = vpack.c.bf16 %v838_v41, %v837_v40 }
 0x1e9   :  { %943 = vmatpush1.bf16.msra.mxu1 %v843_v52  ;;  %v850_v57 = vpack.c.bf16 %v842_v50, %v841_v46  ;;  %v895_v40 = vpop.permute.xlu1 %894 }
 0x1ea   :  { %944 = vmatprep.subr.bf16.mxu1 %v846_v51  ;;  %v890_v29 = vpop.permute.xlu0 %889 }
 0x1ed   :  { %945 = vmatpush1.bf16.msra.mxu1 %v845_v15 }
 0x1ee   :  { %946 = vmatprep.subr.bf16.mxu1 %v848_v55 }
 0x1f1   :  { %947 = vmatpush1.bf16.msra.mxu1 %v847_v18 }
 0x1f2   :  { %948 = vmatprep.subr.bf16.mxu1 %v850_v57 }
 0x1f5   :  { %949 = vmatpush1.bf16.msra.mxu1 %v849_v24 }
 0x1f8   :  { %1895 = vmatmul.mubr.msk.bf16.vlgmr.msra.gmra.mrb[8].mxu1 %vm927_vm2, %v1947_v58 }
 0x1f9   :  { %982 = vmatprep.mubr.bf16.mxu1 %v2107_v7 }
 0x200   :  { %1896 = vmatmul.mubr.msk.bf16.gmra.mrb[12].mxu1 %vm927_vm2, %v1948_v59 }
 0x201   :  { %992 = vmatprep.mubr.bf16.mxu1 %v2107_v7 }
 0x208   :  { %1897 = vmatmul.mubr.msk.bf16.gmra.mrb[16].mxu1 %vm927_vm2, %v1949_v60  ;;  %v900_v60 = vpop.permute.xlu0 %899 }
 0x209   :  { %1002 = vmatprep.mubr.bf16.mxu1 %v2107_v7 }
 0x210   :  { %1898 = vmatmul.mubr.msk.bf16.gmra.mrb[20].mxu1 %vm927_vm2, %v1950_v62 }
 0x2cb   :  { %v974_v0 = vpop.f32.mrb[8].mxu1 }
 0x2cc   :  { %v976_v1 = vpop.f32.mrb[9].mxu1  ;;  %v975_v52 = vadd.f32 %v974_v0, %v870_v63 }
 0x2cd   :  { %v978_v4 = vpop.f32.mrb[10].mxu1  ;;  %v977_v15 = vadd.f32 %v976_v1, %v870_v63  ;;  %v905_v63 = vpop.permute.xlu1 %904 }
 0x2ce   :  { %v979_v56 = vadd.f32 %v978_v4, %v875_v3  ;;  %v980_v9 = vpop.f32.mrb[11].mxu1 }
 0x2cf   :  { %v981_v18 = vadd.f32 %v980_v9, %v875_v3 }
 0x2d0   :  { %v1021_v24 = vpack.c.bf16 %v979_v56, %v975_v52 }
 0x2d1   :  { %v1022_v32 = vpack.c.bf16 %v981_v18, %v977_v15  ;;  %v1951_v18 = vld [vmem:[%s3071_s6] sm:$0xff]  }
 0x2d3   :  { %v984_v61 = vpop.f32.mrb[12].mxu1  ;;  %1109 = vmatprep.subr.bf16.mxu0 %v1022_v32  ;;  %v1953_v32 = vld [vmem:[%s3071_s6 + $0x10] sm:$0xff]  }
 0x2d4   :  { %v986_v33 = vpop.f32.mrb[13].mxu1  ;;  %1110 = vmatpush1.bf16.msra.mxu0 %v1021_v24  ;;  %v985_v10 = vadd.f32 %v984_v61, %v880_v2  ;;  %v1952_v24 = vld [vmem:[%s3071_s6 + $0x8] sm:$0xff]   ;;  %v1954_v61 = vld [vmem:[%s3071_s6 + $0x18] sm:$0xff]   ;;  %s2109_s6 = smov [#allocation2]  }
 0x2d5   :  { %v988_v8 = vpop.f32.mrb[14].mxu1  ;;  %v987_v16 = vadd.f32 %v986_v33, %v880_v2  ;;  %v1040_v2 = vpop.permute.xlu0 %1039  ;;  %s1613_s24 = sshll.u32 %s2109_s6, 4  ;;  %s1614_s24 = int_to_ptr.vmem [resolvable:$true] %s1613_s24 }
 0x2d6   :  { %v989_v5 = vadd.f32 %v988_v8, %v885_v6  ;;  %v990_v11 = vpop.f32.mrb[15].mxu1  ;;  %s2083_s0 = scalar_lea.vmem %s1614_s24, 1024  ;;  %p2088_p1 = scmp.lt.s32.totalorder %s1614_s24, %s1614_s24 }
 0x2d7   :  { %v991_v17 = vadd.f32 %v990_v11, %v885_v6  ;;  %v1045_v11 = vpop.permute.xlu1 %1044  ;;  %p2084_p0 = scmp.ne.s32.totalorder %s1614_s24, %s2083_s0  ;;  %p2089_p2 = scmp.lt.s32.totalorder %s2083_s0, %s2083_s0 }
 0x2d8   :  { %v1023_v20 = vpack.c.bf16 %v989_v5, %v985_v10 }
 0x2d9   :  { %v1024_v21 = vpack.c.bf16 %v991_v17, %v987_v16  ;;  %p2090_p3 = por %p2089_p2, %p2088_p1 }
 0x2db   :  { %v994_v26 = vpop.f32.mrb[16].mxu1  ;;  %1111 = vmatprep.subr.bf16.mxu0 %v1024_v21  ;;  %p2091_p4 = pnand %p2090_p3, %p2084_p0 }
 0x2dc   :  { %v996_v38 = vpop.f32.mrb[17].mxu1  ;;  %1112 = vmatpush1.bf16.msra.mxu0 %v1023_v20  ;;  %v995_v42 = vadd.f32 %v994_v26, %v890_v29 }
 0x2dd   :  { %v998_v41 = vpop.f32.mrb[18].mxu1  ;;  %v997_v51 = vadd.f32 %v996_v38, %v890_v29 }
 0x2de   :  { %v999_v46 = vadd.f32 %v998_v41, %v895_v40  ;;  %v1000_v50 = vpop.f32.mrb[19].mxu1 }
 0x2df   :  { %v1001_v55 = vadd.f32 %v1000_v50, %v895_v40 }
 0x2e0   :  { %v1025_v57 = vpack.c.bf16 %v999_v46, %v995_v42  ;;  %v1050_v46 = vpop.permute.xlu0 %1049 }
 0x2e1   :  { %v1026_v58 = vpack.c.bf16 %v1001_v55, %v997_v51 }
 0x2e3   :  { %v1004_v59 = vpop.f32.mrb[20].mxu1  ;;  %1113 = vmatprep.subr.bf16.mxu0 %v1026_v58 }
 0x2e4   :  { %v1006_v62 = vpop.f32.mrb[21].mxu1  ;;  %1114 = vmatpush1.bf16.msra.mxu0 %v1025_v57  ;;  %v1005_v1 = vadd.f32 %v1004_v59, %v900_v60 }
 0x2e5   :  { %v1008_v0 = vpop.f32.mrb[22].mxu1  ;;  %v1007_v52 = vadd.f32 %v1006_v62, %v900_v60  ;;  %v1055_v60 = vpop.permute.xlu1 %1054 }
 0x2e6   :  { %v1009_v3 = vadd.f32 %v1008_v0, %v905_v63  ;;  %v1010_v4 = vpop.f32.mrb[23].mxu1 }
 0x2e7   :  { %v1011_v56 = vadd.f32 %v1010_v4, %v905_v63 }
 0x2e8   :  { %v1027_v9 = vpack.c.bf16 %v1009_v3, %v1005_v1 }
 0x2e9   :  { %v1028_v15 = vpack.c.bf16 %v1011_v56, %v1007_v52 }
 0x2eb   :  { %1115 = vmatprep.subr.bf16.mxu0 %v1028_v15 }
 0x2ec   :  { %1116 = vmatpush1.bf16.msra.mxu0 %v1027_v9  ;;  %v1060_v9 = vpop.permute.xlu0 %1059 }
 0x2ef   :  { %1903 = vmatmul.mubr.msk.bf16.vlgmr.msra.gmra.mrb[12].mxu0 %vm3112_vm1, %v1951_v18 }
 0x2f0   :  { %1151 = vmatprep.mubr.bf16.mxu0 %v2107_v7 }
 0x2f7   :  { %1904 = vmatmul.mubr.msk.bf16.gmra.mrb[16].mxu0 %vm3113_vm8, %v1952_v24 }
 0x2f8   :  { %1161 = vmatprep.mubr.bf16.mxu0 %v2107_v7 }
 0x2ff   :  { %1905 = vmatmul.mubr.msk.bf16.gmra.mrb[20].mxu0 %vm3114_vm14, %v1953_v32 }
 0x300   :  { %1171 = vmatprep.mubr.bf16.mxu0 %v2107_v7 }
 0x307   :  { %1906 = vmatmul.mubr.msk.bf16.gmra.mrb[24].mxu0 %vm3115_vm7, %v1954_v61  ;;  %v1065_v61 = vpop.permute.xlu1 %1064 }
 0x3c2   :  { %v1143_v33 = vpop.f32.mrb[12].mxu0 }
 0x3c3   :  { %v2856_v6 = vadd.f32 %v1143_v33, %v1040_v2  ;;  %v1145_v8 = vpop.f32.mrb[13].mxu0 }
 0x3c4   :  { %v2858_v10 = vadd.f32 %v1145_v8, %v1040_v2  ;;  %v1147_v5 = vpop.f32.mrb[14].mxu0 }
 0x3c5   :  { %v1149_v16 = vpop.f32.mrb[15].mxu0  ;;  %1182 = vadd.xlane.f32.xlu0 %v2856_v6  ;;  %v2864_v7 = vadd.f32 %v1147_v5, %v1045_v11  ;;  %v1207_v38 = vmul.f32 %v2856_v6, %v2856_v6 }
 0x3c6   :  { %v2861_v17 = vadd.f32 %v1149_v16, %v1045_v11  ;;  %1387 = vadd.xlane.f32.xlu1 %v2858_v10  ;;  %v1411_v42 = vmul.f32 %v2858_v10, %v2858_v10  ;;  %v1070_v11 = vpop.permute.xlu0 %1069 }
 0x3c7   :  { %v1208_v26 = vmul.f32 %v2864_v7, %v2864_v7 }
 0x3c8   :  { %v1412_v41 = vmul.f32 %v2861_v17, %v2861_v17 }
 0x3c9   :  { %1389 = vadd.xlane.f32.xlu0 %v2861_v17 }
 0x3ca   :  { %v1153_v20 = vpop.f32.mrb[16].mxu0  ;;  %1184 = vadd.xlane.f32.xlu1 %v2864_v7 }
 0x3cb   :  { %v1155_v21 = vpop.f32.mrb[17].mxu0  ;;  %v2876_v51 = vadd.f32 %v1153_v20, %v1050_v46 }
 0x3cc   :  { %v1157_v29 = vpop.f32.mrb[18].mxu0  ;;  %v2878_v57 = vadd.f32 %v1155_v21, %v1050_v46 }
 0x3cd   :  { %v1159_v40 = vpop.f32.mrb[19].mxu0  ;;  %1217 = vadd.xlane.f32.xlu0 %v1208_v26  ;;  %v2882_v62 = vadd.f32 %v1157_v29, %v1055_v60  ;;  %v1209_v63 = vmul.f32 %v2876_v51, %v2876_v51  ;;  %v1075_v29 = vpop.permute.xlu1 %1074 }
 0x3ce   :  { %1215 = vadd.xlane.f32.xlu1 %v1207_v38  ;;  %v2887_v1 = vadd.f32 %v1159_v40, %v1055_v60  ;;  %v1413_v52 = vmul.f32 %v2878_v57, %v2878_v57 }
 0x3cf   :  { %v1210_v15 = vmul.f32 %v2882_v62, %v2882_v62 }
 0x3d0   :  { %v1414_v24 = vmul.f32 %v2887_v1, %v2887_v1 }
 0x3d1   :  { %1421 = vadd.xlane.f32.xlu0 %v1412_v41 }
 0x3d2   :  { %v1163_v50 = vpop.f32.mrb[20].mxu0  ;;  %1419 = vadd.xlane.f32.xlu1 %v1411_v42 }
 0x3d3   :  { %v1165_v55 = vpop.f32.mrb[21].mxu0  ;;  %v2894_v18 = vadd.f32 %v1163_v50, %v1060_v9 }
 0x3d4   :  { %v1167_v58 = vpop.f32.mrb[22].mxu0  ;;  %v2899_v32 = vadd.f32 %v1165_v55, %v1060_v9 }
 0x3d5   :  { %v1169_v59 = vpop.f32.mrb[23].mxu0  ;;  %1186 = vadd.xlane.f32.xlu0 %v2876_v51  ;;  %v2902_v2 = vadd.f32 %v1167_v58, %v1065_v61  ;;  %v1211_v33 = vmul.f32 %v2894_v18, %v2894_v18 }
 0x3d6   :  { %1391 = vadd.xlane.f32.xlu1 %v2878_v57  ;;  %v2907_v8 = vadd.f32 %v1169_v59, %v1065_v61  ;;  %v1415_v5 = vmul.f32 %v2899_v32, %v2899_v32 }
 0x3d7   :  { %v1212_v16 = vmul.f32 %v2902_v2, %v2902_v2 }
 0x3d8   :  { %v1416_v21 = vmul.f32 %v2907_v8, %v2907_v8 }
 0x3d9   :  { %1188 = vadd.xlane.f32.xlu0 %v2882_v62 }
 0x3da   :  { %v1173_v0 = vpop.f32.mrb[24].mxu0  ;;  %1219 = vadd.xlane.f32.xlu1 %v1209_v63 }
 0x3db   :  { %v1175_v3 = vpop.f32.mrb[25].mxu0  ;;  %v2914_v20 = vadd.f32 %v1173_v0, %v1070_v11 }
 0x3dc   :  { %v1177_v4 = vpop.f32.mrb[26].mxu0  ;;  %v2919_v26 = vadd.f32 %v1175_v3, %v1070_v11 }
 0x3dd   :  { %v1179_v56 = vpop.f32.mrb[27].mxu0  ;;  %1393 = vadd.xlane.f32.xlu0 %v2887_v1  ;;  %v2922_v38 = vadd.f32 %v1177_v4, %v1075_v29  ;;  %v1213_v40 = vmul.f32 %v2914_v20, %v2914_v20 }
 0x3de   :  { %1423 = vadd.xlane.f32.xlu1 %v1413_v52  ;;  %v2927_v41 = vadd.f32 %v1179_v56, %v1075_v29  ;;  %v1417_v42 = vmul.f32 %v2919_v26, %v2919_v26 }
 0x3df   :  { %v1214_v46 = vmul.f32 %v2922_v38, %v2922_v38 }
 0x3e0   :  { %v1418_v50 = vmul.f32 %v2927_v41, %v2927_v41 }
 0x3e1   :  { %1221 = vadd.xlane.f32.xlu0 %v1210_v15 }
 0x3e2   :  { %1190 = vadd.xlane.f32.xlu1 %v2894_v18 }
 0x3e5   :  { %1425 = vadd.xlane.f32.xlu0 %v1414_v24 }
 0x3e6   :  { %1395 = vadd.xlane.f32.xlu1 %v2899_v32 }
 0x3e9   :  { %1192 = vadd.xlane.f32.xlu0 %v2902_v2 }
 0x3ea   :  { %1223 = vadd.xlane.f32.xlu1 %v1211_v33 }
 0x3ed   :  { %1397 = vadd.xlane.f32.xlu0 %v2907_v8 }
 0x3ee   :  { %1427 = vadd.xlane.f32.xlu1 %v1415_v5 }
 0x3f1   :  { %1225 = vadd.xlane.f32.xlu0 %v1212_v16 }
 0x3f2   :  { %1194 = vadd.xlane.f32.xlu1 %v2914_v20 }
 0x3f5   :  { %1429 = vadd.xlane.f32.xlu0 %v1416_v21 }
 0x3f6   :  { %1399 = vadd.xlane.f32.xlu1 %v2919_v26 }
 0x3f9   :  { %1196 = vadd.xlane.f32.xlu0 %v2922_v38 }
 0x3fa   :  { %1227 = vadd.xlane.f32.xlu1 %v1213_v40 }
 0x3fd   :  { %1401 = vadd.xlane.f32.xlu0 %v2927_v41 }
 0x3fe   :  { %1431 = vadd.xlane.f32.xlu1 %v1417_v42 }
 0x401   :  { %1229 = vadd.xlane.f32.xlu0 %v1214_v46 }
 0x405   :  { %1433 = vadd.xlane.f32.xlu0 %v1418_v50 }
 0x452   :  { %v1183_v55 = vpop.xlane.xlu0 %1182 }
 0x453   :  { %v1388_v58 = vpop.xlane.xlu1 %1387  ;;  %v1199_v24 = vmul.f32 0.0078125, %v1183_v55 }
 0x454   :  { %v2936_v40 = vmul.f32 0.0078125, %v1388_v58 }
 0x455   :  { %v1247_v16 = vmul.f32 %v1199_v24, %v1199_v24  ;;  %v1239_v22 = vsub.f32 %v2856_v6, %v1199_v24 }
 0x456   :  { %v1390_v59 = vpop.xlane.xlu0 %1389 }
 0x457   :  { %v1185_v60 = vpop.xlane.xlu1 %1184 }
 0x458   :  { %v1200_v3 = vmul.f32 0.0078125, %v1185_v60  ;;  %v2938_v60 = vmul.f32 0.0078125, %v1390_v59 }
 0x45a   :  { %v1218_v63 = vpop.xlane.xlu0 %1217  ;;  %v1248_v56 = vmul.f32 %v1200_v3, %v1200_v3 }
 0x45b   :  { %v1216_v0 = vpop.xlane.xlu1 %1215  ;;  %v1232_v9 = vmul.f32 0.0078125, %v1218_v63  ;;  %v1451_v63 = vmul.f32 %v2936_v40, %v2936_v40 }
 0x45c   :  { %v1231_v5 = vmul.f32 0.0078125, %v1216_v0 }
 0x45d   :  { %v1256_v33 = vsub.f32 %v1232_v9, %v1248_v56 }
 0x45e   :  { %v1422_v4 = vpop.xlane.xlu0 %1421  ;;  %v1255_v42 = vsub.f32 %v1231_v5, %v1247_v16 }
 0x45f   :  { %v1420_v52 = vpop.xlane.xlu1 %1419  ;;  %v1264_v29 = vadd.f32 1e-05, %v1256_v33  ;;  %v1436_v37 = vmul.f32 0.0078125, %v1422_v4  ;;  %v1452_v33 = vmul.f32 %v2938_v60, %v2938_v60 }
 0x460   :  { %v1435_v50 = vmul.f32 0.0078125, %v1420_v52  ;;  %v1263_v55 = vadd.f32 1e-05, %v1255_v42 }
 0x461   :  { %1955 = vrsqrt.f32 %v1264_v29  ;;  %v1460_v5 = vsub.f32 %v1436_v37, %v1452_v33 }
 0x462   :  { %v1187_v15 = vpop.xlane.xlu0 %1186  ;;  %v1459_v0 = vsub.f32 %v1435_v50, %v1451_v63  ;;  %1957 = vrsqrt.f32 %v1263_v55  ;;  %v1240_v63 = vsub.f32 %v2864_v7, %v1200_v3 }
 0x463   :  { %v1392_v61 = vpop.xlane.xlu1 %1391  ;;  %v2944_v58 = vmul.f32 0.0078125, %v1187_v15  ;;  %v1468_v36 = vadd.f32 1e-05, %v1460_v5 }
 0x464   :  { %v1467_v16 = vadd.f32 1e-05, %v1459_v0  ;;  %v2951_v47 = vmul.f32 0.0078125, %v1392_v61 }
 0x465   :  { %v1249_v42 = vmul.f32 %v2944_v58, %v2944_v58 }
 0x466   :  { %v1189_v11 = vpop.xlane.xlu0 %1188  ;;  %1959 = vrsqrt.f32 %v1467_v16  ;;  %v1453_v7 = vmul.f32 %v2951_v47, %v2951_v47 }
 0x467   :  { %v1220_v21 = vpop.xlane.xlu1 %1219  ;;  %1961 = vrsqrt.f32 %v1468_v36 }
 0x468   :  { %v1233_v59 = vmul.f32 0.0078125, %v1220_v21 }
 0x46a   :  { %v1394_v46 = vpop.xlane.xlu0 %1393  ;;  %v1257_v15 = vsub.f32 %v1233_v59, %v1249_v42  ;;  %v2962_v59 = vmul.f32 0.0078125, %v1189_v11 }
 0x46b   :  { %v1424_v54 = vpop.xlane.xlu1 %1423  ;;  %v1956_v4 = vpop.eup %1955 }
 0x46c   :  { %v1437_v33 = vmul.f32 0.0078125, %v1424_v54  ;;  %v1958_v5 = vpop.eup %1957  ;;  %v1265_v3 = vadd.f32 1e-05, %v1257_v15 }
 0x46e   :  { %v1222_v56 = vpop.xlane.xlu0 %1221  ;;  %1963 = vrsqrt.f32 %v1265_v3 }
 0x46f   :  { %v1191_v9 = vpop.xlane.xlu1 %1190  ;;  %v1234_v6 = vmul.f32 0.0078125, %v1222_v56 }
 0x470   :  { %v2946_v29 = vmul.f32 0.0078125, %v1191_v9  ;;  %v1280_v9 = vmul.f32 %v1956_v4, %v1240_v63  ;;  %v1461_v4 = vsub.f32 %v1437_v33, %v1453_v7  ;;  %v1279_v63 = vmul.f32 %v1958_v5, %v1239_v22  ;;  %v1960_v33 = vpop.eup %1959 }
 0x471   :  { %v1443_v5 = vsub.f32 %v2858_v10, %v2936_v40  ;;  %v1444_v10 = vsub.f32 %v2861_v17, %v2938_v60 }
 0x472   :  { %v1426_v52 = vpop.xlane.xlu0 %1425  ;;  %v1251_v37 = vmul.f32 %v2946_v29, %v2946_v29  ;;  %v1908_v36 = vmul.f32 -1.442695, %v1280_v9  ;;  %v1469_v22 = vadd.f32 1e-05, %v1461_v4  ;;  %v1243_v17 = vsub.f32 %v2894_v18, %v2946_v29 }
 0x473   :  { %v1396_v53 = vpop.xlane.xlu1 %1395 }
 0x474   :  { %v2955_v21 = vmul.f32 0.0078125, %v1396_v53 }
 0x476   :  { %v1193_v50 = vpop.xlane.xlu0 %1192  ;;  %v1455_v53 = vmul.f32 %v2955_v21, %v2955_v21 }
 0x477   :  { %v1224_v55 = vpop.xlane.xlu1 %1223  ;;  %v2960_v61 = vmul.f32 0.0078125, %v1193_v50 }
 0x478   :  { %v1235_v0 = vmul.f32 0.0078125, %v1224_v55  ;;  %v2966_v55 = vmul.f32 0.0078125, %v1394_v46  ;;  %v1438_v46 = vmul.f32 0.0078125, %v1426_v52 }
 0x479   :  { %v1252_v50 = vmul.f32 %v2960_v61, %v2960_v61 }
 0x47a   :  { %v1259_v25 = vsub.f32 %v1235_v0, %v1251_v37  ;;  %v1398_v43 = vpop.xlane.xlu0 %1397  ;;  %v1454_v7 = vmul.f32 %v2966_v55, %v2966_v55 }
 0x47b   :  { %v1428_v16 = vpop.xlane.xlu1 %1427  ;;  %v2970_v15 = vmul.f32 0.0078125, %v1398_v43 }
 0x47c   :  { %v1267_v42 = vadd.f32 1e-05, %v1259_v25  ;;  %v1439_v54 = vmul.f32 0.0078125, %v1428_v16  ;;  %v1250_v25 = vmul.f32 %v2962_v59, %v2962_v59  ;;  %v1907_v16 = vmul.f32 -1.442695, %v1279_v63 }
 0x47d   :  { %v1462_v40 = vsub.f32 %v1438_v46, %v1454_v7 }
 0x47e   :  { %v1463_v24 = vsub.f32 %v1439_v54, %v1455_v53  ;;  %v1226_v37 = vpop.xlane.xlu0 %1225  ;;  %1965 = vrsqrt.f32 %v1267_v42  ;;  %v1258_v43 = vsub.f32 %v1234_v6, %v1250_v25  ;;  %v1456_v53 = vmul.f32 %v2970_v15, %v2970_v15 }
 0x47f   :  { %v1236_v11 = vmul.f32 0.0078125, %v1226_v37  ;;  %v1195_v0 = vpop.xlane.xlu1 %1194  ;;  %1967 = vpow2.f32 %v1908_v36  ;;  %v1962_v37 = vpop.eup %1961  ;;  %v1483_v36 = vmul.f32 %v1960_v33, %v1443_v5  ;;  %v1470_v60 = vadd.f32 1e-05, %v1462_v40 }
 0x480   :  { %v1471_v9 = vadd.f32 1e-05, %v1463_v24  ;;  %v2980_v52 = vmul.f32 0.0078125, %v1195_v0  ;;  %v1266_v6 = vadd.f32 1e-05, %v1258_v43  ;;  %v1964_v5 = vpop.eup %1963 }
 0x481   :  { %v1260_v56 = vsub.f32 %v1236_v11, %v1252_v50  ;;  %v1484_v50 = vmul.f32 %v1962_v37, %v1444_v10 }
 0x482   :  { %v1430_v3 = vpop.xlane.xlu0 %1429  ;;  %1969 = vrsqrt.f32 %v1471_v9  ;;  %v1253_v33 = vmul.f32 %v2980_v52, %v2980_v52 }
 0x483   :  { %v1268_v54 = vadd.f32 1e-05, %v1260_v56  ;;  %v1440_v42 = vmul.f32 0.0078125, %v1430_v3  ;;  %v1400_v24 = vpop.xlane.xlu1 %1399  ;;  %1971 = vrsqrt.f32 %v1469_v22  ;;  %v1919_v56 = vmul.f32 -1.442695, %v1483_v36 }
 0x484   :  { %v2986_v9 = vmul.f32 0.0078125, %v1400_v24  ;;  %v1920_v3 = vmul.f32 -1.442695, %v1484_v50  ;;  %v1447_v36 = vsub.f32 %v2899_v32, %v2955_v21  ;;  %v1445_v32 = vsub.f32 %v2878_v57, %v2951_v47 }
 0x485   :  { %v1464_v4 = vsub.f32 %v1440_v42, %v1456_v53  ;;  %1973 = vrsqrt.f32 %v1268_v54 }
 0x486   :  { %v1197_v63 = vpop.xlane.xlu0 %1196  ;;  %1975 = vpow2.f32 %v1907_v16  ;;  %v1241_v16 = vsub.f32 %v2876_v51, %v2944_v58  ;;  %v1457_v24 = vmul.f32 %v2986_v9, %v2986_v9  ;;  %v1244_v51 = vsub.f32 %v2902_v2, %v2960_v61 }
 0x487   :  { %v1472_v11 = vadd.f32 1e-05, %v1464_v4  ;;  %v1228_v25 = vpop.xlane.xlu1 %1227  ;;  %v2992_v54 = vmul.f32 0.0078125, %v1197_v63 }
 0x488   :  { %v1237_v0 = vmul.f32 0.0078125, %v1228_v25  ;;  %v1966_v22 = vpop.eup %1965  ;;  %v1281_v37 = vmul.f32 %v1964_v5, %v1241_v16 }
 0x489   :  { %1977 = vrsqrt.f32 %v1472_v11  ;;  %v1968_v43 = vpop.eup %1967  ;;  %v1283_v53 = vmul.f32 %v1966_v22, %v1243_v17  ;;  %v1254_v11 = vmul.f32 %v2992_v54, %v2992_v54 }
 0x48a   :  { %1979 = vrsqrt.f32 %v1266_v6  ;;  %v1261_v46 = vsub.f32 %v1237_v0, %v1253_v33  ;;  %v1402_v7 = vpop.xlane.xlu0 %1401  ;;  %v1300_v4 = vadd.f32 1.0, %v1968_v43  ;;  %v1909_v2 = vmul.f32 -1.442695, %v1281_v37 }
 0x48b   :  { %v1432_v42 = vpop.xlane.xlu1 %1431  ;;  %1981 = vpow2.f32 %v1919_v56  ;;  %v1911_v10 = vmul.f32 -1.442695, %v1283_v53  ;;  %v3004_v21 = vmul.f32 0.0078125, %v1402_v7 }
 0x48c   :  { %v1269_v18 = vadd.f32 1e-05, %v1261_v46  ;;  %v1441_v29 = vmul.f32 0.0078125, %v1432_v42  ;;  %1983 = vrsqrt.f32 %v1470_v60  ;;  %v1970_v40 = vpop.eup %1969  ;;  %v1448_v60 = vsub.f32 %v2907_v8, %v2970_v15 }
 0x48d   :  { %v1972_v63 = vpop.eup %1971  ;;  %v1487_v50 = vmul.f32 %v1970_v40, %v1447_v36  ;;  %v1458_v57 = vmul.f32 %v3004_v21, %v3004_v21 }
 0x48e   :  { %1985 = vrsqrt.f32 %v1269_v18  ;;  %v1465_v58 = vsub.f32 %v1441_v29, %v1457_v24  ;;  %v1230_v6 = vpop.xlane.xlu0 %1229  ;;  %v1485_v43 = vmul.f32 %v1972_v63, %v1445_v32  ;;  %v1242_v24 = vsub.f32 %v2882_v62, %v2962_v59 }
 0x48f   :  { %1987 = vpow2.f32 %v1911_v10  ;;  %v1238_v25 = vmul.f32 0.0078125, %v1230_v6  ;;  %v1974_v56 = vpop.eup %1973  ;;  %v1923_v61 = vmul.f32 -1.442695, %v1487_v50  ;;  %v1245_v10 = vsub.f32 %v2914_v20, %v2980_v52 }
 0x490   :  { %1989 = vpow2.f32 %v1920_v3  ;;  %v1473_v33 = vadd.f32 1e-05, %v1465_v58  ;;  %v1976_v0 = vpop.eup %1975  ;;  %v1284_v5 = vmul.f32 %v1974_v56, %v1244_v51  ;;  %v1921_v37 = vmul.f32 -1.442695, %v1485_v43 }
 0x491   :  { %v1262_v17 = vsub.f32 %v1238_v25, %v1254_v11  ;;  %1991 = vrcp.f32 %v1300_v4  ;;  %v1299_v42 = vadd.f32 1.0, %v1976_v0  ;;  %v1446_v4 = vsub.f32 %v2887_v1, %v2966_v55 }
 0x492   :  { %v1434_v22 = vpop.xlane.xlu0 %1433  ;;  %1993 = vpow2.f32 %v1923_v61  ;;  %v1912_v3 = vmul.f32 -1.442695, %v1284_v5  ;;  %v1449_v1 = vsub.f32 %v2919_v26, %v2986_v9  ;;  %v1246_v5 = vsub.f32 %v2922_v38, %v2992_v54 }
 0x493   :  { %v1978_v46 = vpop.eup %1977  ;;  %v1270_v16 = vadd.f32 1e-05, %v1262_v17  ;;  %1995 = vrsqrt.f32 %v1473_v33  ;;  %v1442_v7 = vmul.f32 0.0078125, %v1434_v22 }
 0x494   :  { %v1980_v53 = vpop.eup %1979  ;;  %v1488_v47 = vmul.f32 %v1978_v46, %v1448_v60  ;;  %1997 = vpow2.f32 %v1909_v2 }
 0x495   :  { %v1982_v18 = vpop.eup %1981  ;;  %1999 = vpow2.f32 %v1912_v3  ;;  %v1466_v15 = vsub.f32 %v1442_v7, %v1458_v57  ;;  %v1282_v36 = vmul.f32 %v1980_v53, %v1242_v24  ;;  %v1450_v3 = vsub.f32 %v2927_v41, %v3004_v21 }
 0x496   :  { %v1924_v8 = vmul.f32 -1.442695, %v1488_v47  ;;  %v1984_v29 = vpop.eup %1983  ;;  %2001 = vrsqrt.f32 %v1270_v16  ;;  %v1503_v6 = vadd.f32 1.0, %v1982_v18 }
 0x497   :  { %v1474_v51 = vadd.f32 1e-05, %v1466_v15  ;;  %v1486_v63 = vmul.f32 %v1984_v29, %v1446_v4  ;;  %v1910_v11 = vmul.f32 -1.442695, %v1282_v36 }
 0x498   :  { %v1986_v40 = vpop.eup %1985  ;;  %2003 = vpow2.f32 %v1924_v8 }
 0x499   :  { %v1988_v58 = vpop.eup %1987  ;;  %2005 = vrcp.f32 %v1299_v42  ;;  %v1285_v62 = vmul.f32 %v1986_v40, %v1245_v10  ;;  %v1922_v32 = vmul.f32 -1.442695, %v1486_v63 }
 0x49a   :  { %v1990_v59 = vpop.eup %1989  ;;  %v1323_v50 = vadd.f32 1.0, %v1988_v58  ;;  %2007 = vrsqrt.f32 %v1474_v51 }
 0x49b   :  { %2009 = vpow2.f32 %v1921_v37  ;;  %v1913_v25 = vmul.f32 -1.442695, %v1285_v62  ;;  %v3016_v56 = vpop.eup %1991  ;;  %v1504_v52 = vadd.f32 1.0, %v1990_v59 }
 0x49c   :  { %2011 = vrcp.f32 %v1323_v50  ;;  %v1994_v20 = vpop.eup %1993 }
 0x49d   :  { %2013 = vpow2.f32 %v1913_v25  ;;  %v1996_v55 = vpop.eup %1995  ;;  %v1527_v33 = vadd.f32 1.0, %v1994_v20 }
 0x49e   :  { %2015 = vrcp.f32 %v1503_v6  ;;  %v1998_v0 = vpop.eup %1997  ;;  %v1489_v2 = vmul.f32 %v1996_v55, %v1449_v1 }
 0x49f   :  { %2017 = vpow2.f32 %v1910_v11  ;;  %v2000_v61 = vpop.eup %1999  ;;  %v1301_v53 = vadd.f32 1.0, %v1998_v0 }
 0x4a0   :  { %2019 = vrcp.f32 %v1527_v33  ;;  %v2002_v17 = vpop.eup %2001  ;;  %v1324_v60 = vadd.f32 1.0, %v2000_v61  ;;  %v1925_v22 = vmul.f32 -1.442695, %v1489_v2 }
 0x4a1   :  { %2021 = vrcp.f32 %v1504_v52  ;;  %v1286_v26 = vmul.f32 %v2002_v17, %v1246_v5 }
 0x4a2   :  { %v2004_v46 = vpop.eup %2003  ;;  %2023 = vpow2.f32 %v1922_v32 }
 0x4a3   :  { %v2006_v9 = vpop.eup %2005  ;;  %2025 = vrcp.f32 %v1324_v60  ;;  %v1528_v43 = vadd.f32 1.0, %v2004_v46  ;;  %v1914_v47 = vmul.f32 -1.442695, %v1286_v26 }
 0x4a4   :  { %v2008_v16 = vpop.eup %2007  ;;  %2027 = vpow2.f32 %v1925_v22 }
 0x4a5   :  { %v2010_v57 = vpop.eup %2009  ;;  %2029 = vrcp.f32 %v1528_v43  ;;  %v1490_v38 = vmul.f32 %v2008_v16, %v1450_v3 }
 0x4a6   :  { %v2012_v54 = vpop.eup %2011  ;;  %2031 = vpow2.f32 %v1914_v47  ;;  %v1505_v41 = vadd.f32 1.0, %v2010_v57 }
 0x4a7   :  { %v2014_v7 = vpop.eup %2013  ;;  %v1335_v42 = vsub.f32 %v2006_v9, %v2012_v54  ;;  %v1926_v24 = vmul.f32 -1.442695, %v1490_v38  ;;  %2033 = vrcp.f32 %v1301_v53 }
 0x4a8   :  { %v2016_v18 = vpop.eup %2015  ;;  %v1325_v8 = vadd.f32 1.0, %v2014_v7 }
 0x4a9   :  { %v2018_v15 = vpop.eup %2017  ;;  %v1915_v29 = vmul.f32 -1.442695, %v1335_v42  ;;  %2035 = vpow2.f32 %v1926_v24 }
 0x4aa   :  { %v2020_v37 = vpop.eup %2019  ;;  %2037 = vrcp.f32 %v1325_v8  ;;  %v1302_v40 = vadd.f32 1.0, %v2018_v15 }
 0x4ab   :  { %v2022_v21 = vpop.eup %2021  ;;  %2039 = vpow2.f32 %v1915_v29  ;;  %v1539_v36 = vsub.f32 %v2016_v18, %v2020_v37  ;;  %v3116_v37 = vunpack.c.l.bf16 %v2174_v12  ;;  %v3118_v12 = vunpack.c.l.bf16 %v2179_v13 }
 0x4ac   :  { %v2024_v10 = vpop.eup %2023  ;;  %2041 = vrcp.f32 %v1505_v41  ;;  %v3120_v13 = vunpack.c.l.bf16 %v2200_v27  ;;  %v3123_v27 = vsub.f32 %v2210_v30, %v2250_v49 }
 0x4ad   :  { %v2026_v4 = vpop.eup %2025  ;;  %v1927_v51 = vmul.f32 -1.442695, %v1539_v36  ;;  %v1506_v25 = vadd.f32 1.0, %v2024_v10  ;;  %v3117_v36 = vsub.f32 %v2183_v14, %v2223_v35 }
 0x4ae   :  { %v2028_v58 = vpop.eup %2027  ;;  %v1336_v62 = vsub.f32 %v3016_v56, %v2026_v4 }
 0x4af   :  { %v2030_v59 = vpop.eup %2029  ;;  %2043 = vpow2.f32 %v1927_v51  ;;  %v1529_v6 = vadd.f32 1.0, %v2028_v58 }
 0x4b0   :  { %v2032_v63 = vpop.eup %2031  ;;  %2045 = vrcp.f32 %v1302_v40  ;;  %v1916_v50 = vmul.f32 -1.442695, %v1336_v62  ;;  %v1540_v11 = vsub.f32 %v2022_v21, %v2030_v59 }
 0x4b1   :  { %2047 = vrcp.f32 %v1529_v6  ;;  %v1326_v20 = vadd.f32 1.0, %v2032_v63  ;;  %v2034_v52 = vpop.eup %2033  ;;  %v3119_v63 = vsub.f32 %v2188_v19, %v2230_v39  ;;  %v3121_v19 = vsub.f32 %v2191_v23, %v2248_v48 }
 0x4b2   :  { %2049 = vpow2.f32 %v1916_v50  ;;  %v1928_v1 = vmul.f32 -1.442695, %v1540_v11 }
 0x4b3   :  { %v2036_v55 = vpop.eup %2035  ;;  %2051 = vrcp.f32 %v1326_v20 }
 0x4b4   :  { %v2038_v32 = vpop.eup %2037  ;;  %2053 = vpow2.f32 %v1928_v1  ;;  %v1530_v33 = vadd.f32 1.0, %v2036_v55 }
 0x4b5   :  { %v2040_v0 = vpop.eup %2039  ;;  %2055 = vrcp.f32 %v1506_v25  ;;  %v1337_v56 = vsub.f32 %v2034_v52, %v2038_v32 }
 0x4b6   :  { %v1351_v2 = vadd.f32 1.0, %v2040_v0  ;;  %2057 = vrcp.f32 %v1530_v33  ;;  %v2042_v5 = vpop.eup %2041 }
 0x4b7   :  { %v1917_v61 = vmul.f32 -1.442695, %v1337_v56  ;;  %v3122_v56 = vunpack.c.l.bf16 %v2205_v28 }
 0x4b8   :  { %2059 = vrcp.f32 %v1351_v2 }
 0x4b9   :  { %v2044_v17 = vpop.eup %2043  ;;  %2061 = vpow2.f32 %v1917_v61 }
 0x4ba   :  { %v2046_v60 = vpop.eup %2045  ;;  %v1555_v22 = vadd.f32 1.0, %v2044_v17 }
 0x4bb   :  { %v2048_v46 = vpop.eup %2047 }
 0x4bc   :  { %v2050_v26 = vpop.eup %2049  ;;  %2063 = vrcp.f32 %v1555_v22  ;;  %v1541_v9 = vsub.f32 %v2042_v5, %v2048_v46 }
 0x4bd   :  { %v2052_v43 = vpop.eup %2051  ;;  %v1352_v3 = vadd.f32 1.0, %v2050_v26 }
 0x4be   :  { %v2054_v16 = vpop.eup %2053  ;;  %v1929_v53 = vmul.f32 -1.442695, %v1541_v9  ;;  %v1338_v47 = vsub.f32 %v2046_v60, %v2052_v43 }
 0x4bf   :  { %v2056_v57 = vpop.eup %2055  ;;  %2065 = vrcp.f32 %v1352_v3  ;;  %v1556_v38 = vadd.f32 1.0, %v2054_v16 }
 0x4c0   :  { %v2058_v54 = vpop.eup %2057  ;;  %2067 = vpow2.f32 %v1929_v53  ;;  %v1918_v7 = vmul.f32 -1.442695, %v1338_v47 }
 0x4c1   :  { %2069 = vrcp.f32 %v1556_v38  ;;  %v1542_v42 = vsub.f32 %v2056_v57, %v2058_v54 }
 0x4c2   :  { %v2060_v24 = vpop.eup %2059  ;;  %2071 = vpow2.f32 %v1918_v7 }
 0x4c3   :  { %v2062_v18 = vpop.eup %2061  ;;  %v1930_v8 = vmul.f32 -1.442695, %v1542_v42  ;;  %v1375_v15 = vmul.f32 %v2060_v24, %v2214_v31 }
 0x4c4   :  { %v1353_v29 = vadd.f32 1.0, %v2062_v18 }
 0x4c5   :  { %2073 = vpow2.f32 %v1930_v8  ;;  %v1379_v41 = vadd.f32 %v1375_v15, %v3116_v37 }
 0x4c6   :  { %v2064_v21 = vpop.eup %2063  ;;  %2075 = vrcp.f32 %v1353_v29 }
 0x4c7   :  { %1383 = vst [vmem:[#allocation2] sm:$0xff] %v1379_v41  ;;  %v1595_v10 = vmul.f32 %v2064_v21, %v3117_v36 }
 0x4c9   :  { %v2066_v40 = vpop.eup %2065  ;;  %v1599_v4 = vadd.f32 %v1595_v10, %v2223_v35 }
 0x4ca   :  { %v2068_v51 = vpop.eup %2067  ;;  %v1376_v58 = vmul.f32 %v2066_v40, %v2221_v34 }
 0x4cb   :  { %v2070_v62 = vpop.eup %2069  ;;  %v1557_v31 = vadd.f32 1.0, %v2068_v51  ;;  %1604 = vst [vmem:[#allocation2 + $0x20] sm:$0xff] %v1599_v4 }
 0x4cc   :  { %v2072_v59 = vpop.eup %2071  ;;  %v1380_v6 = vadd.f32 %v1376_v58, %v3118_v12  ;;  %v1596_v50 = vmul.f32 %v2070_v62, %v3119_v63 }
 0x4cd   :  { %2077 = vrcp.f32 %v1557_v31  ;;  %v1354_v14 = vadd.f32 1.0, %v2072_v59 }
 0x4ce   :  { %1384 = vst [vmem:[#allocation2 + $0x8] sm:$0xff] %v1380_v6  ;;  %v1600_v11 = vadd.f32 %v1596_v50, %v2230_v39 }
 0x4cf   :  { %v2074_v35 = vpop.eup %2073  ;;  %2079 = vrcp.f32 %v1354_v14 }
 0x4d0   :  { %v2076_v25 = vpop.eup %2075  ;;  %v1558_v34 = vadd.f32 1.0, %v2074_v35  ;;  %1605 = vst [vmem:[#allocation2 + $0x28] sm:$0xff] %v1600_v11 }
 0x4d1   :  { %v1377_v20 = vmul.f32 %v2076_v25, %v2240_v44 }
 0x4d2   :  { %2081 = vrcp.f32 %v1558_v34 }
 0x4d3   :  { %v1381_v52 = vadd.f32 %v1377_v20, %v3120_v13 }
 0x4d5   :  { %1385 = vst [vmem:[#allocation2 + $0x10] sm:$0xff] %v1381_v52 }
 0x4d7   :  { %v2078_v1 = vpop.eup %2077 }
 0x4d8   :  { %v1597_v55 = vmul.f32 %v2078_v1, %v3121_v19 }
 0x4d9   :  { %v2080_v32 = vpop.eup %2079 }
 0x4da   :  { %v1378_v39 = vmul.f32 %v2080_v32, %v2244_v45  ;;  %v1601_v33 = vadd.f32 %v1597_v55, %v2248_v48 }
 0x4dc   :  { %v2082_v0 = vpop.eup %2081  ;;  %v1382_v2 = vadd.f32 %v1378_v39, %v3122_v56  ;;  %1606 = vst [vmem:[#allocation2 + $0x30] sm:$0xff] %v1601_v33 }
 0x4dd   :  { %v1598_v44 = vmul.f32 %v2082_v0, %v3123_v27 }
 0x4de   :  { %1386 = vst [vmem:[#allocation2 + $0x18] sm:$0xff] %v1382_v2 }
 0x4df   :  { %v1602_v23 = vadd.f32 %v1598_v44, %v2250_v49 }
 0x4e1   :  { %1607 = vst [vmem:[#allocation2 + $0x38] sm:$0xff] %v1602_v23 }
 0x4e2   :  { %2094 = shalt.err (!%p2091_p4)
}
 0x4e3   :  { %s2095_s26 = scalar_lea.hbm %s3073_s8, 1024 }
 0x4e4   :  { %p2096_p5 = scmp.ne.s32.totalorder %s3073_s8, %s2095_s26  ;;  %p2099_p6 = scmp.lt.u32.totalorder %s2095_s26, %s3073_s8 }
 0x4e6   :  { %p2101_p7 = pnand %p2099_p6, %p2096_p5 }
 0x4e8   :  { %2104 = shalt.err (!%p2101_p7)
}
 0x4e9   :  { %s2110_s2 = smov 128   ;;  %s2111_s9 = smov 8  }
 0x4ea   :  { %1619 = dma.vmem_to_hbm [thread:$0]  %s1614_s24, 1024, %s3073_s8, [#allocation3], %s2110_s2, %s2110_s2, %s2111_s9  }
 0x4eb   :  { %2105 = dma.done.wait [#allocation3], 1024  }
 0x4ec   :  { %2106 = vsyncadd [#allocation3], 4294966272 }
 0x4ed   :  { %1623 = vsyncpa [#allocation3], 1 }

</bundles_post_ra>
